<compile_context>
chip_gen: v6e
topology: v6e:2x2x1
jax: 0.10.0
libtpu: 0.0.40
codegen_flags: <defaults>
</compile_context>

<pallas_src>
import functools

import jax
import jax.numpy as jnp
import numpy as np
from jax import lax
from jax.experimental import pallas as pl
from jax.experimental.pallas import tpu as pltpu

EPS = 1e-5      # BatchNorm2d default eps
SLOPE = 0.2     # LeakyReLU negative slope


# ------------------------------ kernel bodies -------------------------------

def _conv1_direct_kernel(ho, wo, cin, cpad,
                         s0_ref, wa_ref, y1_ref, y3_ref, stat_ref):
    """Pass 1 (one image per grid step): conv 4x4/s2 + folded avgpool/1x1.

    s0_ref  : (Ho+1, Wo+1, 4*Cin) bf16  2x2 space-to-depth of the padded input
    wa_ref  : (4, 4*Cin, 2*Cpad)  bf16  per-(dy,dx) [conv1 | 0.25*direct] weights
    y1_ref  : (Ho*Wo, Cpad)       bf16  raw conv1 output (pre-BN)
    y3_ref  : (Ho*Wo, Cpad)       bf16  raw direct-path output (pre-BN)
    stat_ref: (2, 2*Cpad)         f32   per-image [sum; sum of squares]
    """
    acc = jnp.zeros((ho * wo, 2 * cpad), jnp.float32)
    for dy in range(2):
        for dx in range(2):
            win = s0_ref[dy:dy + ho, dx:dx + wo, :]          # (Ho, Wo, 4*Cin)
            acc = acc + jnp.dot(win.reshape(ho * wo, 4 * cin),
                                wa_ref[2 * dy + dx],
                                preferred_element_type=jnp.float32)
    y1_ref[...] = acc[:, :cpad].astype(jnp.bfloat16)
    y3_ref[...] = acc[:, cpad:].astype(jnp.bfloat16)
    stat_ref[...] = jnp.concatenate(
        [jnp.sum(acc, axis=0, keepdims=True),
         jnp.sum(acc * acc, axis=0, keepdims=True)], axis=0)


def _bn1_conv2_kernel(ho, wo, cpad,
                      y1_ref, s1_ref, w2_ref, y2_ref, stat_ref, h1pad_ref):
    """Pass 2 (one image per grid step): BN1 (precomputed scale/shift) +
    LReLU + conv 3x3/s1/p1 (ky-grouped accumulating matmuls) + BN2 stats.

    y1_ref   : (Ho*Wo, Cpad)       bf16
    s1_ref   : (2, Cpad)           f32   rows = [scale1, shift1]
    w2_ref   : (3, 3*Cpad, Cpad)   bf16  ky-grouped conv2 weights
    y2_ref   : (Ho*Wo, Cpad)       bf16  raw conv2 output (pre-BN)
    stat_ref : (2, Cpad)           f32   per-image [sum; sum of squares]
    h1pad_ref: (Ho+2, Wo+2, Cpad)  bf16  scratch: spatially padded conv2 input
    """
    # Zero the 1-pixel border every step: the grid axis is "parallel", so on a
    # multi-TensorCore part each core owns its own scratch and an init gated on
    # program_id()==0 would never run on the second core.  Border-only zeroing
    # keeps this cheap (4 thin stores).
    zrow = jnp.zeros((1, wo + 2, cpad), jnp.bfloat16)
    h1pad_ref[0:1, :, :] = zrow
    h1pad_ref[ho + 1:ho + 2, :, :] = zrow
    zcol = jnp.zeros((ho + 2, 1, cpad), jnp.bfloat16)
    h1pad_ref[:, 0:1, :] = zcol
    h1pad_ref[:, wo + 1:wo + 2, :] = zcol

    z = y1_ref[...].astype(jnp.float32) * s1_ref[0:1, :] + s1_ref[1:2, :]
    h1 = jnp.where(z > 0, z, SLOPE * z).astype(jnp.bfloat16)
    # TODO(synk): the offset-1 interior store / kx-shifted loads are sublane
    # misaligned; a (W,C)->lane-fused scratch layout would make the kx shifts
    # lane-aligned Cpad-multiple slices.
    h1pad_ref[1:1 + ho, 1:1 + wo, :] = h1.reshape(ho, wo, cpad)

    # 3x3 conv as 3 ky-grouped matmuls (K = 3*Cpad): no (M, 9*Cpad) temp.
    acc = jnp.zeros((ho * wo, cpad), jnp.float32)
    for ky in range(3):
        slabs = [h1pad_ref[ky:ky + ho, kx:kx + wo, :] for kx in range(3)]
        imk = jnp.concatenate(slabs, axis=-1).reshape(ho * wo, 3 * cpad)
        acc = acc + jnp.dot(imk, w2_ref[ky], preferred_element_type=jnp.float32)

    y2_ref[...] = acc.astype(jnp.bfloat16)
    stat_ref[...] = jnp.concatenate(
        [jnp.sum(acc, axis=0, keepdims=True),
         jnp.sum(acc * acc, axis=0, keepdims=True)], axis=0)


def _combine_kernel(y2_ref, y3_ref, s2_ref, s3_ref, out_ref):
    """Pass 3: BN2+LReLU (main) and BN3+LReLU (direct) with the final /2 folded
    into both scale/shift pairs, then sum.  Lane-dense bf16 output."""
    z2 = y2_ref[...].astype(jnp.float32) * s2_ref[0:1, :] + s2_ref[1:2, :]
    z3 = y3_ref[...].astype(jnp.float32) * s3_ref[0:1, :] + s3_ref[1:2, :]
    main = jnp.where(z2 > 0, z2, SLOPE * z2)
    direct = jnp.where(z3 > 0, z3, SLOPE * z3)
    out_ref[...] = (main + direct).astype(jnp.bfloat16)


# ----------------------------- parameter setup ------------------------------

def _spectral_normalize(w, n_iter=50):
    # weight / top singular value of W reshaped to (out_channels, -1),
    # via a converged power iteration from a deterministic start vector.
    wm = w.reshape(w.shape[0], -1)
    v = jnp.ones((wm.shape[1],), jnp.float32)
    v = v / jnp.linalg.norm(v)
    u = wm @ v
    for _ in range(n_iter):
        u = wm @ v
        u = u / (jnp.linalg.norm(u) + 1e-12)
        v = wm.T @ u
        v = v / (jnp.linalg.norm(v) + 1e-12)
    sigma = u @ (wm @ v)
    return w / sigma


def init_params(key, in_planes, out_planes):
    k1, k2, k3 = jax.random.split(key, 3)

    def conv_init(k, shape):  # (O, I, KH, KW), uniform(-1/sqrt(fan_in), ...)
        fan_in = shape[1] * shape[2] * shape[3]
        bound = 1.0 / float(np.sqrt(fan_in))
        return jax.random.uniform(k, shape, jnp.float32, -bound, bound)

    w1 = _spectral_normalize(conv_init(k1, (out_planes, in_planes, 4, 4)))
    w2 = _spectral_normalize(conv_init(k2, (out_planes, out_planes, 3, 3)))
    w3 = _spectral_normalize(conv_init(k3, (out_planes, in_planes, 1, 1)))
    ones = jnp.ones((1, out_planes), jnp.float32)
    zeros = jnp.zeros((1, out_planes), jnp.float32)
    return dict(w1=w1, w2=w2, w3=w3,
                g1=ones, b1=zeros, g2=ones, b2=zeros, g3=ones, b3=zeros)


# --------------------------------- wrapper ----------------------------------

def _round_up(x, mult):
    return (x + mult - 1) // mult * mult


def _vmem_limit(resident_bytes):
    # Residency-derived limit (double-buffered per-step streams + weights +
    # scratch + accumulators) with 50% headroom, clamped to [32 MiB, 100 MiB].
    # TODO(synk): on v7x (64 MiB/TC) cap at ~56 MiB for very large shapes.
    return int(min(100 * 1024 * 1024,
                   max(32 * 1024 * 1024, (resident_bytes * 3) // 2)))


@jax.jit
def down_block_comp(x_nchw, params):
    n, cin, h, w = x_nchw.shape
    cout = params["w1"].shape[0]
    assert h % 2 == 0 and w % 2 == 0, "stride-2 block needs even spatial dims"
    ho, wo = h // 2, w // 2
    m = n * ho * wo
    m_img = ho * wo
    cpad = _round_up(cout, 128)            # lane-dense channel dim
    grid = (n,)                            # one grid step per image
    bf2, f4 = 2, 4                         # bytes per element

    # ---- input layout: NHWC, pad 1, 2x2 space-to-depth (single layout pass,
    #      no 4x im2col duplication; conv1 runs as 4 shifted-window matmuls).
    x_nhwc = jnp.transpose(x_nchw, (0, 2, 3, 1))
    xpad = jnp.pad(x_nhwc, ((0, 0), (1, 1), (1, 1), (0, 0)))
    s0 = xpad.reshape(n, ho + 1, 2, wo + 1, 2, cin)
    s0 = jnp.transpose(s0, (0, 1, 3, 2, 4, 5)).reshape(n, ho + 1, wo + 1, 4 * cin)
    s0 = s0.astype(jnp.bfloat16)

    # ---- conv1 + direct weights blocked by (dy, dx); row order (py, px, cin).
    w1b = params["w1"].reshape(cout, cin, 2, 2, 2, 2)          # (o,i,dy,py,dx,px)
    w1b = jnp.transpose(w1b, (2, 4, 3, 5, 1, 0)).reshape(2, 2, 4 * cin, cout)
    # direct path: AvgPool2d(2,2) == 0.25 * sum of the 4 central conv1 taps, so
    # the 1x1 conv on the pooled input folds into the same 4 weight blocks
    # (scaling by 0.25 is a power of two -> exact in bf16).
    w3b = jnp.zeros((2, 2, 4 * cin, cout), jnp.float32)
    w3q = 0.25 * params["w3"][:, :, 0, 0].T                    # (Cin, Cout)
    for ky in (1, 2):
        for kx in (1, 2):
            dy, py, dx, px = ky // 2, ky % 2, kx // 2, kx % 2
            r0 = (2 * py + px) * cin
            w3b = w3b.at[dy, dx, r0:r0 + cin, :].set(w3q)
    pad_o = ((0, 0), (0, 0), (0, 0), (0, cpad - cout))
    wa = jnp.concatenate([jnp.pad(w1b, pad_o), jnp.pad(w3b, pad_o)], axis=-1)
    wa = wa.reshape(4, 4 * cin, 2 * cpad).astype(jnp.bfloat16)

    # ---- conv2 weights, ky-grouped: (3, 3*Cpad, Cpad), rows ordered (kx, cin).
    w2t = jnp.transpose(params["w2"], (2, 3, 1, 0))            # (ky, kx, I, O)
    w2t = jnp.pad(w2t, ((0, 0), (0, 0), (0, cpad - cout), (0, cpad - cout)))
    w2g = w2t.reshape(3, 3 * cpad, cpad).astype(jnp.bfloat16)

    # =============== pass 1: conv1 + direct conv + BN1/BN3 stats ============
    flops_a = 2 * m * (16 * cin) * (2 * cpad)
    bytes_a = (s0.size * bf2 + wa.size * bf2
               + 2 * m * cpad * bf2 + n * 2 * 2 * cpad * f4)
    vmem_a = _vmem_limit(
        2 * ((ho + 1) * (wo + 1) * 4 * cin * bf2 + 2 * m_img * cpad * bf2
             + 2 * 2 * cpad * f4)
        + wa.size * bf2 + m_img * 2 * cpad * f4)

    y1_raw, y3_raw, stat_a = pl.pallas_call(
        functools.partial(_conv1_direct_kernel, ho, wo, cin, cpad),
        grid=grid,
        in_specs=[
            pl.BlockSpec((None, ho + 1, wo + 1, 4 * cin), lambda i: (i, 0, 0, 0)),
            pl.BlockSpec((4, 4 * cin, 2 * cpad), lambda i: (0, 0, 0)),
        ],
        out_specs=(
            pl.BlockSpec((None, m_img, cpad), lambda i: (i, 0, 0)),
            pl.BlockSpec((None, m_img, cpad), lambda i: (i, 0, 0)),
            pl.BlockSpec((None, 2, 2 * cpad), lambda i: (i, 0, 0)),
        ),
        out_shape=(
            jax.ShapeDtypeStruct((n, m_img, cpad), jnp.bfloat16),
            jax.ShapeDtypeStruct((n, m_img, cpad), jnp.bfloat16),
            jax.ShapeDtypeStruct((n, 2, 2 * cpad), jnp.float32),
        ),
        compiler_params=pltpu.CompilerParams(
            dimension_semantics=("parallel",), vmem_limit_bytes=vmem_a),
        cost_estimate=pl.CostEstimate(flops=flops_a, transcendentals=0,
                                      bytes_accessed=bytes_a),
    )(s0, wa)

    # BN statistics (single-pass sum / sum-of-squares) -> per-channel
    # scale/shift; the block's final /2 is folded into BN2 and BN3.
    def pad_vec(v):
        return jnp.pad(v.reshape(-1).astype(jnp.float32), (0, cpad - cout))

    def bn_scale_shift(gamma, beta, s, ssq, post):
        mean = s / float(m)
        var = jnp.maximum(ssq / float(m) - mean * mean, 0.0)   # guard E[y^2]-m^2
        scale = post * pad_vec(gamma) * lax.rsqrt(var + EPS)
        shift = post * pad_vec(beta) - mean * scale
        return jnp.stack([scale, shift], axis=0)               # (2, Cpad) f32

    sa = jnp.sum(stat_a, axis=0)                               # (2, 2*Cpad)
    s1 = bn_scale_shift(params["g1"], params["b1"], sa[0, :cpad], sa[1, :cpad], 1.0)
    s3 = bn_scale_shift(params["g3"], params["b3"], sa[0, cpad:], sa[1, cpad:], 0.5)

    # =============== pass 2: BN1 + LReLU + conv2 + BN2 stats ================
    flops_b = 2 * m * (9 * cpad) * cpad
    bytes_b = (m * cpad * bf2 + 2 * cpad * f4 + w2g.size * bf2
               + m * cpad * bf2 + n * 2 * cpad * f4)
    vmem_b = _vmem_limit(
        2 * (2 * m_img * cpad * bf2 + 2 * cpad * f4)
        + w2g.size * bf2 + 2 * cpad * f4
        + (ho + 2) * (wo + 2) * cpad * bf2
        + m_img * 3 * cpad * bf2 + m_img * cpad * f4)

    y2_raw, stat_b = pl.pallas_call(
        functools.partial(_bn1_conv2_kernel, ho, wo, cpad),
        grid=grid,
        in_specs=[
            pl.BlockSpec((None, m_img, cpad), lambda i: (i, 0, 0)),
            pl.BlockSpec((2, cpad), lambda i: (0, 0)),
            pl.BlockSpec((3, 3 * cpad, cpad), lambda i: (0, 0, 0)),
        ],
        out_specs=(
            pl.BlockSpec((None, m_img, cpad), lambda i: (i, 0, 0)),
            pl.BlockSpec((None, 2, cpad), lambda i: (i, 0, 0)),
        ),
        out_shape=(
            jax.ShapeDtypeStruct((n, m_img, cpad), jnp.bfloat16),
            jax.ShapeDtypeStruct((n, 2, cpad), jnp.float32),
        ),
        scratch_shapes=[pltpu.VMEM((ho + 2, wo + 2, cpad), jnp.bfloat16)],
        compiler_params=pltpu.CompilerParams(
            dimension_semantics=("parallel",), vmem_limit_bytes=vmem_b),
        cost_estimate=pl.CostEstimate(flops=flops_b, transcendentals=0,
                                      bytes_accessed=bytes_b),
    )(y1_raw, s1, w2g)

    sb = jnp.sum(stat_b, axis=0)                               # (2, Cpad)
    s2 = bn_scale_shift(params["g2"], params["b2"], sb[0], sb[1], 0.5)

    # =============== pass 3: BN2/BN3 + LReLU + (main + direct)/2 ============
    flops_c = 8 * m * cpad
    bytes_c = 3 * m * cpad * bf2 + 2 * 2 * cpad * f4
    vmem_c = _vmem_limit(2 * 3 * m_img * cpad * bf2 + 2 * 2 * cpad * f4
                         + 2 * m_img * cpad * f4)

    out_flat = pl.pallas_call(
        _combine_kernel,
        grid=grid,
        in_specs=[
            pl.BlockSpec((None, m_img, cpad), lambda i: (i, 0, 0)),
            pl.BlockSpec((None, m_img, cpad), lambda i: (i, 0, 0)),
            pl.BlockSpec((2, cpad), lambda i: (0, 0)),
            pl.BlockSpec((2, cpad), lambda i: (0, 0)),
        ],
        out_specs=pl.BlockSpec((None, m_img, cpad), lambda i: (i, 0, 0)),
        out_shape=jax.ShapeDtypeStruct((n, m_img, cpad), jnp.bfloat16),
        compiler_params=pltpu.CompilerParams(
            dimension_semantics=("parallel",), vmem_limit_bytes=vmem_c),
        cost_estimate=pl.CostEstimate(flops=flops_c, transcendentals=0,
                                      bytes_accessed=bytes_c),
    )(y2_raw, y3_raw, s2, s3)

    out = out_flat.reshape(n, ho, wo, cpad)[..., :cout].astype(jnp.float32)
    return jnp.transpose(out, (0, 3, 1, 2))                    # back to NCHW


# ----------------------------- pure-JAX reference ---------------------------

def reference(x, params):
    """Faithful NCHW reference; conv operands rounded to bf16 to mirror the
    kernel's MXU numerics (accumulation and BN math in f32)."""
    dn = ("NCHW", "OIHW", "NCHW")
    hp = lax.Precision.HIGHEST

    def bf(a):
        return a.astype(jnp.bfloat16).astype(jnp.float32)

    def bn_lrelu(y, g, b):
        mean = jnp.mean(y, axis=(0, 2, 3), keepdims=True)
        var = jnp.mean((y - mean) ** 2, axis=(0, 2, 3), keepdims=True)
        yn = (y - mean) * lax.rsqrt(var + EPS)
        yn = yn * g.reshape(1, -1, 1, 1) + b.reshape(1, -1, 1, 1)
        return jnp.where(yn > 0, yn, SLOPE * yn)

    y = lax.conv_general_dilated(bf(x), bf(params["w1"]), (2, 2), ((1, 1), (1, 1)),
                                 dimension_numbers=dn, precision=hp)
    y = bn_lrelu(y, params["g1"], params["b1"])
    y = lax.conv_general_dilated(bf(y), bf(params["w2"]), (1, 1), ((1, 1), (1, 1)),
                                 dimension_numbers=dn, precision=hp)
    main = bn_lrelu(y, params["g2"], params["b2"])

    nb, c, h, w = x.shape
    pooled = bf(x).reshape(nb, c, h // 2, 2, w // 2, 2).mean(axis=(3, 5))
    d = lax.conv_general_dilated(pooled, bf(params["w3"]), (1, 1), ((0, 0), (0, 0)),
                                 dimension_numbers=dn, precision=hp)
    direct = bn_lrelu(d, params["g3"], params["b3"])
    return (main + direct) / 2


if __name__ == "__main__":
    key = jax.random.PRNGKey(0)
    kdata, kparam = jax.random.split(key)

    in_planes, out_planes = 4, 8
    N, H, W = 2, 16, 16

    x = jax.random.normal(kdata, (N, in_planes, H, W), jnp.float32)
    params = init_params(kparam, in_planes, out_planes)

    out = jax.block_until_ready(down_block_comp(x, params))
    assert out.shape == (N, out_planes, H // 2, W // 2)

    ref = jax.block_until_ready(reference(x, params))
    np.testing.assert_allclose(np.asarray(out), np.asarray(ref),
                               rtol=2e-2, atol=2e-2)
    print("KERNEL_OK")
</pallas_src>

<mosaic_0001>
module attributes {stable_mosaic.version = 11 : i64} {
  func.func @_conv1_direct_kernel(%arg0: i32, %arg1: memref<1x9x9x16xbf16, #tpu.memory_space<vmem>>, %arg2: memref<4x16x256xbf16, #tpu.memory_space<vmem>>, %arg3: memref<1x64x128xbf16, #tpu.memory_space<vmem>>, %arg4: memref<1x64x128xbf16, #tpu.memory_space<vmem>>, %arg5: memref<1x2x256xf32, #tpu.memory_space<vmem>>) attributes {dimension_semantics = [#tpu.dimension_semantics<parallel>], iteration_bounds = array<i64: 2>, scalar_prefetch = 0 : i64, scratch_operands = 0 : i64, tpu.core_type = #tpu.core_type<tc>, window_params = [{transform_indices = @transform_0, window_bounds = array<i64: 1, 9, 9, 16>}, {pipeline_mode = #tpu.pipeline_mode<synchronous>, transform_indices = @transform_1, window_bounds = array<i64: 4, 16, 256>}, {transform_indices = @transform_2, window_bounds = array<i64: 1, 64, 128>}, {transform_indices = @transform_3, window_bounds = array<i64: 1, 64, 128>}, {transform_indices = @transform_4, window_bounds = array<i64: 1, 2, 256>}]} {
    %cst = arith.constant 0.000000e+00 : f32
    %0 = vector.broadcast %cst : f32 to vector<64x256xf32>
    %c0 = arith.constant 0 : index
    %c0_0 = arith.constant 0 : index
    %c0_1 = arith.constant 0 : index
    %c0_2 = arith.constant 0 : index
    %1 = vector.load %arg1[%c0, %c0_0, %c0_1, %c0_2] : memref<1x9x9x16xbf16, #tpu.memory_space<vmem>>, vector<1x8x8x16xbf16>
    %2 = vector.shape_cast %1 : vector<1x8x8x16xbf16> to vector<8x8x16xbf16>
    %3 = vector.shape_cast %2 : vector<8x8x16xbf16> to vector<64x16xbf16>
    %c0_3 = arith.constant 0 : index
    %c0_4 = arith.constant 0 : index
    %c0_5 = arith.constant 0 : index
    %4 = vector.load %arg2[%c0_3, %c0_4, %c0_5] : memref<4x16x256xbf16, #tpu.memory_space<vmem>>, vector<1x16x256xbf16>
    %5 = vector.shape_cast %4 : vector<1x16x256xbf16> to vector<16x256xbf16>
    %cst_6 = arith.constant dense<0.000000e+00> : vector<64x256xf32>
    %6 = tpu.matmul %3, %5, %cst_6 {dimension_numbers = #tpu.dot_dimension_numbers<[1], [0], [0], [1], [0, 0, 1, 1], [], []>} : vector<64x16xbf16>, vector<16x256xbf16>, vector<64x256xf32> -> vector<64x256xf32>
    %7 = arith.addf %0, %6 : vector<64x256xf32>
    %c0_7 = arith.constant 0 : index
    %c0_8 = arith.constant 0 : index
    %c1 = arith.constant 1 : index
    %c0_9 = arith.constant 0 : index
    %8 = vector.load %arg1[%c0_7, %c0_8, %c1, %c0_9] : memref<1x9x9x16xbf16, #tpu.memory_space<vmem>>, vector<1x8x8x16xbf16>
    %9 = vector.shape_cast %8 : vector<1x8x8x16xbf16> to vector<8x8x16xbf16>
    %10 = vector.shape_cast %9 : vector<8x8x16xbf16> to vector<64x16xbf16>
    %c1_10 = arith.constant 1 : index
    %c0_11 = arith.constant 0 : index
    %c0_12 = arith.constant 0 : index
    %11 = vector.load %arg2[%c1_10, %c0_11, %c0_12] : memref<4x16x256xbf16, #tpu.memory_space<vmem>>, vector<1x16x256xbf16>
    %12 = vector.shape_cast %11 : vector<1x16x256xbf16> to vector<16x256xbf16>
    %cst_13 = arith.constant dense<0.000000e+00> : vector<64x256xf32>
    %13 = tpu.matmul %10, %12, %cst_13 {dimension_numbers = #tpu.dot_dimension_numbers<[1], [0], [0], [1], [0, 0, 1, 1], [], []>} : vector<64x16xbf16>, vector<16x256xbf16>, vector<64x256xf32> -> vector<64x256xf32>
    %14 = arith.addf %7, %13 : vector<64x256xf32>
    %c0_14 = arith.constant 0 : index
    %c1_15 = arith.constant 1 : index
    %c0_16 = arith.constant 0 : index
    %c0_17 = arith.constant 0 : index
    %15 = vector.load %arg1[%c0_14, %c1_15, %c0_16, %c0_17] : memref<1x9x9x16xbf16, #tpu.memory_space<vmem>>, vector<1x8x8x16xbf16>
    %16 = vector.shape_cast %15 : vector<1x8x8x16xbf16> to vector<8x8x16xbf16>
    %17 = vector.shape_cast %16 : vector<8x8x16xbf16> to vector<64x16xbf16>
    %c2 = arith.constant 2 : index
    %c0_18 = arith.constant 0 : index
    %c0_19 = arith.constant 0 : index
    %18 = vector.load %arg2[%c2, %c0_18, %c0_19] : memref<4x16x256xbf16, #tpu.memory_space<vmem>>, vector<1x16x256xbf16>
    %19 = vector.shape_cast %18 : vector<1x16x256xbf16> to vector<16x256xbf16>
    %cst_20 = arith.constant dense<0.000000e+00> : vector<64x256xf32>
    %20 = tpu.matmul %17, %19, %cst_20 {dimension_numbers = #tpu.dot_dimension_numbers<[1], [0], [0], [1], [0, 0, 1, 1], [], []>} : vector<64x16xbf16>, vector<16x256xbf16>, vector<64x256xf32> -> vector<64x256xf32>
    %21 = arith.addf %14, %20 : vector<64x256xf32>
    %c0_21 = arith.constant 0 : index
    %c1_22 = arith.constant 1 : index
    %c1_23 = arith.constant 1 : index
    %c0_24 = arith.constant 0 : index
    %22 = vector.load %arg1[%c0_21, %c1_22, %c1_23, %c0_24] : memref<1x9x9x16xbf16, #tpu.memory_space<vmem>>, vector<1x8x8x16xbf16>
    %23 = vector.shape_cast %22 : vector<1x8x8x16xbf16> to vector<8x8x16xbf16>
    %24 = vector.shape_cast %23 : vector<8x8x16xbf16> to vector<64x16xbf16>
    %c3 = arith.constant 3 : index
    %c0_25 = arith.constant 0 : index
    %c0_26 = arith.constant 0 : index
    %25 = vector.load %arg2[%c3, %c0_25, %c0_26] : memref<4x16x256xbf16, #tpu.memory_space<vmem>>, vector<1x16x256xbf16>
    %26 = vector.shape_cast %25 : vector<1x16x256xbf16> to vector<16x256xbf16>
    %cst_27 = arith.constant dense<0.000000e+00> : vector<64x256xf32>
    %27 = tpu.matmul %24, %26, %cst_27 {dimension_numbers = #tpu.dot_dimension_numbers<[1], [0], [0], [1], [0, 0, 1, 1], [], []>} : vector<64x16xbf16>, vector<16x256xbf16>, vector<64x256xf32> -> vector<64x256xf32>
    %28 = arith.addf %21, %27 : vector<64x256xf32>
    %29 = vector.extract_strided_slice %28 {offsets = [0, 0], sizes = [64, 128], strides = [1, 1]} : vector<64x256xf32> to vector<64x128xf32>
    %30 = arith.truncf %29 : vector<64x128xf32> to vector<64x128xbf16>
    %c0_28 = arith.constant 0 : index
    %c0_29 = arith.constant 0 : index
    %c0_30 = arith.constant 0 : index
    %31 = vector.load %arg3[%c0_28, %c0_29, %c0_30] : memref<1x64x128xbf16, #tpu.memory_space<vmem>>, vector<1x64x128xbf16>
    %32 = vector.shape_cast %31 : vector<1x64x128xbf16> to vector<64x128xbf16>
    %33 = vector.shape_cast %30 : vector<64x128xbf16> to vector<1x64x128xbf16>
    tpu.vector_store %arg3[%c0_28, %c0_29, %c0_30], %33 {strides = array<i32>} : memref<1x64x128xbf16, #tpu.memory_space<vmem>>, vector<1x64x128xbf16>,
    %34 = vector.extract_strided_slice %28 {offsets = [0, 128], sizes = [64, 128], strides = [1, 1]} : vector<64x256xf32> to vector<64x128xf32>
    %35 = arith.truncf %34 : vector<64x128xf32> to vector<64x128xbf16>
    %c0_31 = arith.constant 0 : index
    %c0_32 = arith.constant 0 : index
    %c0_33 = arith.constant 0 : index
    %36 = vector.load %arg4[%c0_31, %c0_32, %c0_33] : memref<1x64x128xbf16, #tpu.memory_space<vmem>>, vector<1x64x128xbf16>
    %37 = vector.shape_cast %36 : vector<1x64x128xbf16> to vector<64x128xbf16>
    %38 = vector.shape_cast %35 : vector<64x128xbf16> to vector<1x64x128xbf16>
    tpu.vector_store %arg4[%c0_31, %c0_32, %c0_33], %38 {strides = array<i32>} : memref<1x64x128xbf16, #tpu.memory_space<vmem>>, vector<1x64x128xbf16>,
    %cst_34 = arith.constant dense<0.000000e+00> : vector<256xf32>
    %39 = vector.multi_reduction <add>, %28, %cst_34 [0] : vector<64x256xf32> to vector<256xf32>
    %40 = vector.shape_cast %39 : vector<256xf32> to vector<1x256xf32>
    %41 = arith.mulf %28, %28 : vector<64x256xf32>
    %cst_35 = arith.constant dense<0.000000e+00> : vector<256xf32>
    %42 = vector.multi_reduction <add>, %41, %cst_35 [0] : vector<64x256xf32> to vector<256xf32>
    %43 = vector.shape_cast %42 : vector<256xf32> to vector<1x256xf32>
    %44 = tpu.concatenate %40, %43 in 0 : vector<1x256xf32>, vector<1x256xf32> -> vector<2x256xf32>
    %c0_36 = arith.constant 0 : index
    %c0_37 = arith.constant 0 : index
    %c0_38 = arith.constant 0 : index
    %45 = vector.load %arg5[%c0_36, %c0_37, %c0_38] : memref<1x2x256xf32, #tpu.memory_space<vmem>>, vector<1x2x256xf32>
    %46 = vector.shape_cast %45 : vector<1x2x256xf32> to vector<2x256xf32>
    %47 = vector.shape_cast %44 : vector<2x256xf32> to vector<1x2x256xf32>
    tpu.vector_store %arg5[%c0_36, %c0_37, %c0_38], %47 {strides = array<i32>} : memref<1x2x256xf32, #tpu.memory_space<vmem>>, vector<1x2x256xf32>,
    return
  }
  func.func @transform_0(%arg0: i32) -> (i32, i32, i32, i32) {
    %c0_i32 = arith.constant 0 : i32
    %c0_i32_0 = arith.constant 0 : i32
    %c0_i32_1 = arith.constant 0 : i32
    %c0_i32_2 = arith.constant 0 : i32
    return %arg0, %c0_i32, %c0_i32_0, %c0_i32_1 : i32, i32, i32, i32
  }
  func.func @transform_1(%arg0: i32) -> (i32, i32, i32) {
    %c0_i32 = arith.constant 0 : i32
    %c0_i32_0 = arith.constant 0 : i32
    %c0_i32_1 = arith.constant 0 : i32
    %c0_i32_2 = arith.constant 0 : i32
    return %c0_i32, %c0_i32_0, %c0_i32_1 : i32, i32, i32
  }
  func.func @transform_2(%arg0: i32) -> (i32, i32, i32) {
    %c0_i32 = arith.constant 0 : i32
    %c0_i32_0 = arith.constant 0 : i32
    %c0_i32_1 = arith.constant 0 : i32
    return %arg0, %c0_i32, %c0_i32_0 : i32, i32, i32
  }
  func.func @transform_3(%arg0: i32) -> (i32, i32, i32) {
    %c0_i32 = arith.constant 0 : i32
    %c0_i32_0 = arith.constant 0 : i32
    %c0_i32_1 = arith.constant 0 : i32
    return %arg0, %c0_i32, %c0_i32_0 : i32, i32, i32
  }
  func.func @transform_4(%arg0: i32) -> (i32, i32, i32) {
    %c0_i32 = arith.constant 0 : i32
    %c0_i32_0 = arith.constant 0 : i32
    %c0_i32_1 = arith.constant 0 : i32
    return %arg0, %c0_i32, %c0_i32_0 : i32, i32, i32
  }
}

module attributes {stable_mosaic.version = 11 : i64} {
  func.func @_bn1_conv2_kernel(%arg0: i32, %arg1: memref<1x64x128xbf16, #tpu.memory_space<vmem>>, %arg2: memref<2x128xf32, #tpu.memory_space<vmem>>, %arg3: memref<3x384x128xbf16, #tpu.memory_space<vmem>>, %arg4: memref<1x64x128xbf16, #tpu.memory_space<vmem>>, %arg5: memref<1x2x128xf32, #tpu.memory_space<vmem>>, %arg6: memref<10x10x128xbf16, #tpu.memory_space<vmem>>) attributes {dimension_semantics = [#tpu.dimension_semantics<parallel>], iteration_bounds = array<i64: 2>, scalar_prefetch = 0 : i64, scratch_operands = 1 : i64, tpu.core_type = #tpu.core_type<tc>, window_params = [{transform_indices = @transform_0, window_bounds = array<i64: 1, 64, 128>}, {pipeline_mode = #tpu.pipeline_mode<synchronous>, transform_indices = @transform_1, window_bounds = array<i64: 2, 128>}, {pipeline_mode = #tpu.pipeline_mode<synchronous>, transform_indices = @transform_2, window_bounds = array<i64: 3, 384, 128>}, {transform_indices = @transform_3, window_bounds = array<i64: 1, 64, 128>}, {transform_indices = @transform_4, window_bounds = array<i64: 1, 2, 128>}]} {
    %cst = arith.constant 0.000000e+00 : bf16
    %0 = vector.broadcast %cst : bf16 to vector<1x10x128xbf16>
    %c0 = arith.constant 0 : index
    %c0_0 = arith.constant 0 : index
    %c0_1 = arith.constant 0 : index
    %1 = vector.load %arg6[%c0, %c0_0, %c0_1] : memref<10x10x128xbf16, #tpu.memory_space<vmem>>, vector<1x10x128xbf16>
    tpu.vector_store %arg6[%c0, %c0_0, %c0_1], %0 {strides = array<i32>} : memref<10x10x128xbf16, #tpu.memory_space<vmem>>, vector<1x10x128xbf16>,
    %c9 = arith.constant 9 : index
    %c0_2 = arith.constant 0 : index
    %c0_3 = arith.constant 0 : index
    %2 = vector.load %arg6[%c9, %c0_2, %c0_3] : memref<10x10x128xbf16, #tpu.memory_space<vmem>>, vector<1x10x128xbf16>
    tpu.vector_store %arg6[%c9, %c0_2, %c0_3], %0 {strides = array<i32>} : memref<10x10x128xbf16, #tpu.memory_space<vmem>>, vector<1x10x128xbf16>,
    %cst_4 = arith.constant 0.000000e+00 : bf16
    %3 = vector.broadcast %cst_4 : bf16 to vector<10x1x128xbf16>
    %c0_5 = arith.constant 0 : index
    %c0_6 = arith.constant 0 : index
    %c0_7 = arith.constant 0 : index
    %4 = vector.load %arg6[%c0_5, %c0_6, %c0_7] : memref<10x10x128xbf16, #tpu.memory_space<vmem>>, vector<10x1x128xbf16>
    tpu.vector_store %arg6[%c0_5, %c0_6, %c0_7], %3 {strides = array<i32>} : memref<10x10x128xbf16, #tpu.memory_space<vmem>>, vector<10x1x128xbf16>,
    %c0_8 = arith.constant 0 : index
    %c9_9 = arith.constant 9 : index
    %c0_10 = arith.constant 0 : index
    %5 = vector.load %arg6[%c0_8, %c9_9, %c0_10] : memref<10x10x128xbf16, #tpu.memory_space<vmem>>, vector<10x1x128xbf16>
    tpu.vector_store %arg6[%c0_8, %c9_9, %c0_10], %3 {strides = array<i32>} : memref<10x10x128xbf16, #tpu.memory_space<vmem>>, vector<10x1x128xbf16>,
    %c0_11 = arith.constant 0 : index
    %c0_12 = arith.constant 0 : index
    %c0_13 = arith.constant 0 : index
    %6 = vector.load %arg1[%c0_11, %c0_12, %c0_13] : memref<1x64x128xbf16, #tpu.memory_space<vmem>>, vector<1x64x128xbf16>
    %7 = vector.shape_cast %6 : vector<1x64x128xbf16> to vector<64x128xbf16>
    %8 = arith.extf %7 : vector<64x128xbf16> to vector<64x128xf32>
    %c0_14 = arith.constant 0 : index
    %c0_15 = arith.constant 0 : index
    %9 = vector.load %arg2[%c0_14, %c0_15] : memref<2x128xf32, #tpu.memory_space<vmem>>, vector<1x128xf32>
    %10 = vector.broadcast %9 : vector<1x128xf32> to vector<64x128xf32>
    %11 = arith.mulf %8, %10 : vector<64x128xf32>
    %c1 = arith.constant 1 : index
    %c0_16 = arith.constant 0 : index
    %12 = vector.load %arg2[%c1, %c0_16] : memref<2x128xf32, #tpu.memory_space<vmem>>, vector<1x128xf32>
    %13 = vector.broadcast %12 : vector<1x128xf32> to vector<64x128xf32>
    %14 = arith.addf %11, %13 : vector<64x128xf32>
    %cst_17 = arith.constant 0.000000e+00 : f32
    %15 = vector.broadcast %cst_17 : f32 to vector<64x128xf32>
    %16 = arith.cmpf ogt, %14, %15 : vector<64x128xf32>
    %cst_18 = arith.constant 2.000000e-01 : f32
    %17 = vector.broadcast %cst_18 : f32 to vector<64x128xf32>
    %18 = arith.mulf %17, %14 : vector<64x128xf32>
    %19 = arith.select %16, %14, %18 : vector<64x128xi1>, vector<64x128xf32>
    %20 = arith.truncf %19 : vector<64x128xf32> to vector<64x128xbf16>
    %21 = vector.shape_cast %20 : vector<64x128xbf16> to vector<8x8x128xbf16>
    %c1_19 = arith.constant 1 : index
    %c1_20 = arith.constant 1 : index
    %c0_21 = arith.constant 0 : index
    %22 = vector.load %arg6[%c1_19, %c1_20, %c0_21] : memref<10x10x128xbf16, #tpu.memory_space<vmem>>, vector<8x8x128xbf16>
    tpu.vector_store %arg6[%c1_19, %c1_20, %c0_21], %21 {strides = array<i32>} : memref<10x10x128xbf16, #tpu.memory_space<vmem>>, vector<8x8x128xbf16>,
    %cst_22 = arith.constant 0.000000e+00 : f32
    %23 = vector.broadcast %cst_22 : f32 to vector<64x128xf32>
    %c0_23 = arith.constant 0 : index
    %c0_24 = arith.constant 0 : index
    %c0_25 = arith.constant 0 : index
    %24 = vector.load %arg6[%c0_23, %c0_24, %c0_25] : memref<10x10x128xbf16, #tpu.memory_space<vmem>>, vector<8x8x128xbf16>
    %c0_26 = arith.constant 0 : index
    %c1_27 = arith.constant 1 : index
    %c0_28 = arith.constant 0 : index
    %25 = vector.load %arg6[%c0_26, %c1_27, %c0_28] : memref<10x10x128xbf16, #tpu.memory_space<vmem>>, vector<8x8x128xbf16>
    %c0_29 = arith.constant 0 : index
    %c2 = arith.constant 2 : index
    %c0_30 = arith.constant 0 : index
    %26 = vector.load %arg6[%c0_29, %c2, %c0_30] : memref<10x10x128xbf16, #tpu.memory_space<vmem>>, vector<8x8x128xbf16>
    %27 = tpu.concatenate %24, %25, %26 in 2 : vector<8x8x128xbf16>, vector<8x8x128xbf16>, vector<8x8x128xbf16> -> vector<8x8x384xbf16>
    %28 = vector.shape_cast %27 : vector<8x8x384xbf16> to vector<64x384xbf16>
    %c0_31 = arith.constant 0 : index
    %c0_32 = arith.constant 0 : index
    %c0_33 = arith.constant 0 : index
    %29 = vector.load %arg3[%c0_31, %c0_32, %c0_33] : memref<3x384x128xbf16, #tpu.memory_space<vmem>>, vector<1x384x128xbf16>
    %30 = vector.shape_cast %29 : vector<1x384x128xbf16> to vector<384x128xbf16>
    %cst_34 = arith.constant dense<0.000000e+00> : vector<64x128xf32>
    %31 = tpu.matmul %28, %30, %cst_34 {dimension_numbers = #tpu.dot_dimension_numbers<[1], [0], [0], [1], [0, 0, 1, 1], [], []>} : vector<64x384xbf16>, vector<384x128xbf16>, vector<64x128xf32> -> vector<64x128xf32>
    %32 = arith.addf %23, %31 : vector<64x128xf32>
    %c1_35 = arith.constant 1 : index
    %c0_36 = arith.constant 0 : index
    %c0_37 = arith.constant 0 : index
    %33 = vector.load %arg6[%c1_35, %c0_36, %c0_37] : memref<10x10x128xbf16, #tpu.memory_space<vmem>>, vector<8x8x128xbf16>
    %c1_38 = arith.constant 1 : index
    %c1_39 = arith.constant 1 : index
    %c0_40 = arith.constant 0 : index
    %34 = vector.load %arg6[%c1_38, %c1_39, %c0_40] : memref<10x10x128xbf16, #tpu.memory_space<vmem>>, vector<8x8x128xbf16>
    %c1_41 = arith.constant 1 : index
    %c2_42 = arith.constant 2 : index
    %c0_43 = arith.constant 0 : index
    %35 = vector.load %arg6[%c1_41, %c2_42, %c0_43] : memref<10x10x128xbf16, #tpu.memory_space<vmem>>, vector<8x8x128xbf16>
    %36 = tpu.concatenate %33, %34, %35 in 2 : vector<8x8x128xbf16>, vector<8x8x128xbf16>, vector<8x8x128xbf16> -> vector<8x8x384xbf16>
    %37 = vector.shape_cast %36 : vector<8x8x384xbf16> to vector<64x384xbf16>
    %c1_44 = arith.constant 1 : index
    %c0_45 = arith.constant 0 : index
    %c0_46 = arith.constant 0 : index
    %38 = vector.load %arg3[%c1_44, %c0_45, %c0_46] : memref<3x384x128xbf16, #tpu.memory_space<vmem>>, vector<1x384x128xbf16>
    %39 = vector.shape_cast %38 : vector<1x384x128xbf16> to vector<384x128xbf16>
    %cst_47 = arith.constant dense<0.000000e+00> : vector<64x128xf32>
    %40 = tpu.matmul %37, %39, %cst_47 {dimension_numbers = #tpu.dot_dimension_numbers<[1], [0], [0], [1], [0, 0, 1, 1], [], []>} : vector<64x384xbf16>, vector<384x128xbf16>, vector<64x128xf32> -> vector<64x128xf32>
    %41 = arith.addf %32, %40 : vector<64x128xf32>
    %c2_48 = arith.constant 2 : index
    %c0_49 = arith.constant 0 : index
    %c0_50 = arith.constant 0 : index
    %42 = vector.load %arg6[%c2_48, %c0_49, %c0_50] : memref<10x10x128xbf16, #tpu.memory_space<vmem>>, vector<8x8x128xbf16>
    %c2_51 = arith.constant 2 : index
    %c1_52 = arith.constant 1 : index
    %c0_53 = arith.constant 0 : index
    %43 = vector.load %arg6[%c2_51, %c1_52, %c0_53] : memref<10x10x128xbf16, #tpu.memory_space<vmem>>, vector<8x8x128xbf16>
    %c2_54 = arith.constant 2 : index
    %c2_55 = arith.constant 2 : index
    %c0_56 = arith.constant 0 : index
    %44 = vector.load %arg6[%c2_54, %c2_55, %c0_56] : memref<10x10x128xbf16, #tpu.memory_space<vmem>>, vector<8x8x128xbf16>
    %45 = tpu.concatenate %42, %43, %44 in 2 : vector<8x8x128xbf16>, vector<8x8x128xbf16>, vector<8x8x128xbf16> -> vector<8x8x384xbf16>
    %46 = vector.shape_cast %45 : vector<8x8x384xbf16> to vector<64x384xbf16>
    %c2_57 = arith.constant 2 : index
    %c0_58 = arith.constant 0 : index
    %c0_59 = arith.constant 0 : index
    %47 = vector.load %arg3[%c2_57, %c0_58, %c0_59] : memref<3x384x128xbf16, #tpu.memory_space<vmem>>, vector<1x384x128xbf16>
    %48 = vector.shape_cast %47 : vector<1x384x128xbf16> to vector<384x128xbf16>
    %cst_60 = arith.constant dense<0.000000e+00> : vector<64x128xf32>
    %49 = tpu.matmul %46, %48, %cst_60 {dimension_numbers = #tpu.dot_dimension_numbers<[1], [0], [0], [1], [0, 0, 1, 1], [], []>} : vector<64x384xbf16>, vector<384x128xbf16>, vector<64x128xf32> -> vector<64x128xf32>
    %50 = arith.addf %41, %49 : vector<64x128xf32>
    %51 = arith.truncf %50 : vector<64x128xf32> to vector<64x128xbf16>
    %c0_61 = arith.constant 0 : index
    %c0_62 = arith.constant 0 : index
    %c0_63 = arith.constant 0 : index
    %52 = vector.load %arg4[%c0_61, %c0_62, %c0_63] : memref<1x64x128xbf16, #tpu.memory_space<vmem>>, vector<1x64x128xbf16>
    %53 = vector.shape_cast %52 : vector<1x64x128xbf16> to vector<64x128xbf16>
    %54 = vector.shape_cast %51 : vector<64x128xbf16> to vector<1x64x128xbf16>
    tpu.vector_store %arg4[%c0_61, %c0_62, %c0_63], %54 {strides = array<i32>} : memref<1x64x128xbf16, #tpu.memory_space<vmem>>, vector<1x64x128xbf16>,
    %cst_64 = arith.constant dense<0.000000e+00> : vector<128xf32>
    %55 = vector.multi_reduction <add>, %50, %cst_64 [0] : vector<64x128xf32> to vector<128xf32>
    %56 = vector.shape_cast %55 : vector<128xf32> to vector<1x128xf32>
    %57 = arith.mulf %50, %50 : vector<64x128xf32>
    %cst_65 = arith.constant dense<0.000000e+00> : vector<128xf32>
    %58 = vector.multi_reduction <add>, %57, %cst_65 [0] : vector<64x128xf32> to vector<128xf32>
    %59 = vector.shape_cast %58 : vector<128xf32> to vector<1x128xf32>
    %60 = tpu.concatenate %56, %59 in 0 : vector<1x128xf32>, vector<1x128xf32> -> vector<2x128xf32>
    %c0_66 = arith.constant 0 : index
    %c0_67 = arith.constant 0 : index
    %c0_68 = arith.constant 0 : index
    %61 = vector.load %arg5[%c0_66, %c0_67, %c0_68] : memref<1x2x128xf32, #tpu.memory_space<vmem>>, vector<1x2x128xf32>
    %62 = vector.shape_cast %61 : vector<1x2x128xf32> to vector<2x128xf32>
    %63 = vector.shape_cast %60 : vector<2x128xf32> to vector<1x2x128xf32>
    tpu.vector_store %arg5[%c0_66, %c0_67, %c0_68], %63 {strides = array<i32>} : memref<1x2x128xf32, #tpu.memory_space<vmem>>, vector<1x2x128xf32>,
    return
  }
  func.func @transform_0(%arg0: i32) -> (i32, i32, i32) {
    %c0_i32 = arith.constant 0 : i32
    %c0_i32_0 = arith.constant 0 : i32
    %c0_i32_1 = arith.constant 0 : i32
    return %arg0, %c0_i32, %c0_i32_0 : i32, i32, i32
  }
  func.func @transform_1(%arg0: i32) -> (i32, i32) {
    %c0_i32 = arith.constant 0 : i32
    %c0_i32_0 = arith.constant 0 : i32
    %c0_i32_1 = arith.constant 0 : i32
    return %c0_i32, %c0_i32_0 : i32, i32
  }
  func.func @transform_2(%arg0: i32) -> (i32, i32, i32) {
    %c0_i32 = arith.constant 0 : i32
    %c0_i32_0 = arith.constant 0 : i32
    %c0_i32_1 = arith.constant 0 : i32
    %c0_i32_2 = arith.constant 0 : i32
    return %c0_i32, %c0_i32_0, %c0_i32_1 : i32, i32, i32
  }
  func.func @transform_3(%arg0: i32) -> (i32, i32, i32) {
    %c0_i32 = arith.constant 0 : i32
    %c0_i32_0 = arith.constant 0 : i32
    %c0_i32_1 = arith.constant 0 : i32
    return %arg0, %c0_i32, %c0_i32_0 : i32, i32, i32
  }
  func.func @transform_4(%arg0: i32) -> (i32, i32, i32) {
    %c0_i32 = arith.constant 0 : i32
    %c0_i32_0 = arith.constant 0 : i32
    %c0_i32_1 = arith.constant 0 : i32
    return %arg0, %c0_i32, %c0_i32_0 : i32, i32, i32
  }
}

module attributes {stable_mosaic.version = 11 : i64} {
  func.func @_combine_kernel(%arg0: i32, %arg1: memref<1x64x128xbf16, #tpu.memory_space<vmem>>, %arg2: memref<1x64x128xbf16, #tpu.memory_space<vmem>>, %arg3: memref<2x128xf32, #tpu.memory_space<vmem>>, %arg4: memref<2x128xf32, #tpu.memory_space<vmem>>, %arg5: memref<1x64x128xbf16, #tpu.memory_space<vmem>>) attributes {dimension_semantics = [#tpu.dimension_semantics<parallel>], iteration_bounds = array<i64: 2>, scalar_prefetch = 0 : i64, scratch_operands = 0 : i64, tpu.core_type = #tpu.core_type<tc>, window_params = [{transform_indices = @transform_0, window_bounds = array<i64: 1, 64, 128>}, {transform_indices = @transform_1, window_bounds = array<i64: 1, 64, 128>}, {pipeline_mode = #tpu.pipeline_mode<synchronous>, transform_indices = @transform_2, window_bounds = array<i64: 2, 128>}, {pipeline_mode = #tpu.pipeline_mode<synchronous>, transform_indices = @transform_3, window_bounds = array<i64: 2, 128>}, {transform_indices = @transform_4, window_bounds = array<i64: 1, 64, 128>}]} {
    %c0 = arith.constant 0 : index
    %c0_0 = arith.constant 0 : index
    %c0_1 = arith.constant 0 : index
    %0 = vector.load %arg1[%c0, %c0_0, %c0_1] : memref<1x64x128xbf16, #tpu.memory_space<vmem>>, vector<1x64x128xbf16>
    %1 = vector.shape_cast %0 : vector<1x64x128xbf16> to vector<64x128xbf16>
    %2 = arith.extf %1 : vector<64x128xbf16> to vector<64x128xf32>
    %c0_2 = arith.constant 0 : index
    %c0_3 = arith.constant 0 : index
    %3 = vector.load %arg3[%c0_2, %c0_3] : memref<2x128xf32, #tpu.memory_space<vmem>>, vector<1x128xf32>
    %4 = vector.broadcast %3 : vector<1x128xf32> to vector<64x128xf32>
    %5 = arith.mulf %2, %4 : vector<64x128xf32>
    %c1 = arith.constant 1 : index
    %c0_4 = arith.constant 0 : index
    %6 = vector.load %arg3[%c1, %c0_4] : memref<2x128xf32, #tpu.memory_space<vmem>>, vector<1x128xf32>
    %7 = vector.broadcast %6 : vector<1x128xf32> to vector<64x128xf32>
    %8 = arith.addf %5, %7 : vector<64x128xf32>
    %c0_5 = arith.constant 0 : index
    %c0_6 = arith.constant 0 : index
    %c0_7 = arith.constant 0 : index
    %9 = vector.load %arg2[%c0_5, %c0_6, %c0_7] : memref<1x64x128xbf16, #tpu.memory_space<vmem>>, vector<1x64x128xbf16>
    %10 = vector.shape_cast %9 : vector<1x64x128xbf16> to vector<64x128xbf16>
    %11 = arith.extf %10 : vector<64x128xbf16> to vector<64x128xf32>
    %c0_8 = arith.constant 0 : index
    %c0_9 = arith.constant 0 : index
    %12 = vector.load %arg4[%c0_8, %c0_9] : memref<2x128xf32, #tpu.memory_space<vmem>>, vector<1x128xf32>
    %13 = vector.broadcast %12 : vector<1x128xf32> to vector<64x128xf32>
    %14 = arith.mulf %11, %13 : vector<64x128xf32>
    %c1_10 = arith.constant 1 : index
    %c0_11 = arith.constant 0 : index
    %15 = vector.load %arg4[%c1_10, %c0_11] : memref<2x128xf32, #tpu.memory_space<vmem>>, vector<1x128xf32>
    %16 = vector.broadcast %15 : vector<1x128xf32> to vector<64x128xf32>
    %17 = arith.addf %14, %16 : vector<64x128xf32>
    %cst = arith.constant 0.000000e+00 : f32
    %18 = vector.broadcast %cst : f32 to vector<64x128xf32>
    %19 = arith.cmpf ogt, %8, %18 : vector<64x128xf32>
    %cst_12 = arith.constant 2.000000e-01 : f32
    %20 = vector.broadcast %cst_12 : f32 to vector<64x128xf32>
    %21 = arith.mulf %20, %8 : vector<64x128xf32>
    %22 = arith.select %19, %8, %21 : vector<64x128xi1>, vector<64x128xf32>
    %cst_13 = arith.constant 0.000000e+00 : f32
    %23 = vector.broadcast %cst_13 : f32 to vector<64x128xf32>
    %24 = arith.cmpf ogt, %17, %23 : vector<64x128xf32>
    %cst_14 = arith.constant 2.000000e-01 : f32
    %25 = vector.broadcast %cst_14 : f32 to vector<64x128xf32>
    %26 = arith.mulf %25, %17 : vector<64x128xf32>
    %27 = arith.select %24, %17, %26 : vector<64x128xi1>, vector<64x128xf32>
    %28 = arith.addf %22, %27 : vector<64x128xf32>
    %29 = arith.truncf %28 : vector<64x128xf32> to vector<64x128xbf16>
    %c0_15 = arith.constant 0 : index
    %c0_16 = arith.constant 0 : index
    %c0_17 = arith.constant 0 : index
    %30 = vector.load %arg5[%c0_15, %c0_16, %c0_17] : memref<1x64x128xbf16, #tpu.memory_space<vmem>>, vector<1x64x128xbf16>
    %31 = vector.shape_cast %30 : vector<1x64x128xbf16> to vector<64x128xbf16>
    %32 = vector.shape_cast %29 : vector<64x128xbf16> to vector<1x64x128xbf16>
    tpu.vector_store %arg5[%c0_15, %c0_16, %c0_17], %32 {strides = array<i32>} : memref<1x64x128xbf16, #tpu.memory_space<vmem>>, vector<1x64x128xbf16>,
    return
  }
  func.func @transform_0(%arg0: i32) -> (i32, i32, i32) {
    %c0_i32 = arith.constant 0 : i32
    %c0_i32_0 = arith.constant 0 : i32
    %c0_i32_1 = arith.constant 0 : i32
    return %arg0, %c0_i32, %c0_i32_0 : i32, i32, i32
  }
  func.func @transform_1(%arg0: i32) -> (i32, i32, i32) {
    %c0_i32 = arith.constant 0 : i32
    %c0_i32_0 = arith.constant 0 : i32
    %c0_i32_1 = arith.constant 0 : i32
    return %arg0, %c0_i32, %c0_i32_0 : i32, i32, i32
  }
  func.func @transform_2(%arg0: i32) -> (i32, i32) {
    %c0_i32 = arith.constant 0 : i32
    %c0_i32_0 = arith.constant 0 : i32
    %c0_i32_1 = arith.constant 0 : i32
    return %c0_i32, %c0_i32_0 : i32, i32
  }
  func.func @transform_3(%arg0: i32) -> (i32, i32) {
    %c0_i32 = arith.constant 0 : i32
    %c0_i32_0 = arith.constant 0 : i32
    %c0_i32_1 = arith.constant 0 : i32
    return %c0_i32, %c0_i32_0 : i32, i32
  }
  func.func @transform_4(%arg0: i32) -> (i32, i32, i32) {
    %c0_i32 = arith.constant 0 : i32
    %c0_i32_0 = arith.constant 0 : i32
    %c0_i32_1 = arith.constant 0 : i32
    return %arg0, %c0_i32, %c0_i32_0 : i32, i32, i32
  }
}

</mosaic_0001>

<bundles_post_ra>
// kernel: down_block_comp.5
= control target key start
LH: loop header
LB: loop body
LE: loop exit
PB: predicated region body
PF: predicated region fallthrough
CT: control target
= control target key end

     0   :  { %s603_s15 = smov 0   ;;  %s698_s0 = inlined_call_operand.vmem [shape: bf16[2,64,128], index: 0, kind: input, shape index: {}]   ;;  %s699_s1 = inlined_call_operand.vmem [shape: bf16[2,64,128], index: 1, kind: input, shape index: {}]   ;;  %s700_s2 = inlined_call_operand.vmem [shape: f32[2,128], index: 2, kind: input, shape index: {}]   ;;  %s701_s3 = inlined_call_operand.vmem [shape: f32[2,128], index: 3, kind: input, shape index: {}]   ;;  %s702_s4 = inlined_call_operand.vmem [shape: bf16[2,64,128], index: 4, kind: output, shape index: {}]  }
   0x1 LB: > { %s465_s16 = sadd.s32 4294967295, %s576_s15   ;;  %p469_p0 = scmp.ge.s32.totalorder %s576_s15, 1  ;;  %s576_s15 = sphi %s603_s15, %s14_s15  }
   0x2   : > { %p172_p1 = scmp.lt.s32.totalorder %s576_s15, 3 }
   0x4   : > { %p173_p2 = pnand %p469_p0, %p172_p1 }
   0x5   : > { %p203_p3 = scmp.lt.s32.totalorder (!%p173_p2), %s465_s16, 1 }
   0x6   : > { %176 = sbr.rel (%p173_p2) target bundleno = 49 (0x31), region = 36 }
   0xb   : > { %s704_s16 = smov (!%p203_p3, %s465_s16), 1  ;;  %v630_v2 = vld [vmem:[%s700_s2] ss:$0 sm:$0xff]  ;;  %v642_v10 = vld [vmem:[%s700_s2 + $0x1] ss:$0 sm:$0xff] }
   0xc   : > { %s611_s17 = sshll.u32 %s704_s16, 5  ;;  %v637_v7 = vld [vmem:[%s701_s3] ss:$0 sm:$0xff]  ;;  %v649_v17 = vld [vmem:[%s701_s3 + $0x1] ss:$0 sm:$0xff] }
   0xd   : > { %s617_s20 = scalar_lea.vmem %s698_s0, %s611_s17  ;;  %s623_s23 = scalar_lea.vmem %s699_s1, %s611_s17 }
   0xe   : > { %v502_v0 = vld [vmem:[%s617_s20] sm:$0xff]   ;;  %v553_v1 = vld [vmem:[%s617_s20 + $0x8] sm:$0xff]   ;;  %v554_v38 = vld [vmem:[%s617_s20 + $0x10] sm:$0xff]   ;;  %s672_s8 = scalar_lea.vmem %s702_s4, %s611_s17 }
   0xf   : > { %v503_v3 = vunpack.c.l.bf16 %v502_v0  ;;  %v504_v4 = vunpack.c.h.bf16 %v502_v0  ;;  %v518_v5 = vld [vmem:[%s623_s23] sm:$0xff]   ;;  %v556_v6 = vld [vmem:[%s623_s23 + $0x8] sm:$0xff]   ;;  %v507_v8 = vunpack.c.l.bf16 %v553_v1  ;;  %v508_v9 = vunpack.c.h.bf16 %v553_v1  ;;  %v557_v39 = vld [vmem:[%s623_s23 + $0x10] sm:$0xff]  }
  0x10   : > { %v519_v11 = vunpack.c.l.bf16 %v518_v5  ;;  %v520_v12 = vunpack.c.h.bf16 %v518_v5  ;;  %v523_v13 = vunpack.c.l.bf16 %v556_v6  ;;  %v524_v14 = vunpack.c.h.bf16 %v556_v6  ;;  %v555_v44 = vld [vmem:[%s617_s20 + $0x18] sm:$0xff]  }
  0x11   : > { %v239_v15 = vmul.f32 %v503_v3, %v630_v2  ;;  %v240_v16 = vmul.f32 %v504_v4, %v630_v2  ;;  %v241_v18 = vmul.f32 %v507_v8, %v630_v2  ;;  %v242_v19 = vmul.f32 %v508_v9, %v630_v2  ;;  %v558_v55 = vld [vmem:[%s623_s23 + $0x18] sm:$0xff]  }
  0x12   : > { %v281_v20 = vmul.f32 %v519_v11, %v637_v7  ;;  %v282_v21 = vmul.f32 %v520_v12, %v637_v7  ;;  %v283_v22 = vmul.f32 %v523_v13, %v637_v7  ;;  %v284_v23 = vmul.f32 %v524_v14, %v637_v7 }
  0x13   : > { %v252_v24 = vadd.f32 %v642_v10, %v239_v15  ;;  %v253_v25 = vadd.f32 %v642_v10, %v240_v16  ;;  %v254_v26 = vadd.f32 %v642_v10, %v241_v18  ;;  %v255_v27 = vadd.f32 %v642_v10, %v242_v19 }
  0x14   : > { %v294_v28 = vadd.f32 %v649_v17, %v281_v20  ;;  %v295_v29 = vadd.f32 %v649_v17, %v282_v21  ;;  %v296_v30 = vadd.f32 %v649_v17, %v283_v22  ;;  %v297_v31 = vadd.f32 %v649_v17, %v284_v23 }
  0x15   : > { %vm302_vm0 = vcmp.gt.f32.partialorder %v252_v24, 0.0  ;;  %vm303_vm1 = vcmp.gt.f32.partialorder %v253_v25, 0.0  ;;  %v310_v32 = vmul.f32 0.2, %v252_v24  ;;  %v311_v33 = vmul.f32 0.2, %v253_v25 }
  0x16   : > { %vm326_vm2 = vcmp.gt.f32.partialorder %v294_v28, 0.0  ;;  %vm327_vm3 = vcmp.gt.f32.partialorder %v295_v29, 0.0  ;;  %v334_v34 = vmul.f32 0.2, %v294_v28  ;;  %v335_v35 = vmul.f32 0.2, %v295_v29 }
  0x17   : > { %v318_v36 = vsel %vm302_vm0, %v252_v24, %v310_v32  ;;  %v319_v37 = vsel %vm303_vm1, %v253_v25, %v311_v33  ;;  %vm304_vm4 = vcmp.gt.f32.partialorder %v254_v26, 0.0  ;;  %vm305_vm5 = vcmp.gt.f32.partialorder %v255_v27, 0.0 }
  0x18   : > { %v342_v40 = vsel %vm326_vm2, %v294_v28, %v334_v34  ;;  %v343_v41 = vsel %vm327_vm3, %v295_v29, %v335_v35  ;;  %v312_v42 = vmul.f32 0.2, %v254_v26  ;;  %v313_v43 = vmul.f32 0.2, %v255_v27 }
  0x19   : > { %v350_v45 = vadd.f32 %v342_v40, %v318_v36  ;;  %v351_v46 = vadd.f32 %v343_v41, %v319_v37  ;;  %vm328_vm6 = vcmp.gt.f32.partialorder %v296_v30, 0.0  ;;  %vm329_vm7 = vcmp.gt.f32.partialorder %v297_v31, 0.0 }
  0x1a   : > { %v320_v47 = vsel %vm304_vm4, %v254_v26, %v312_v42  ;;  %v321_v48 = vsel %vm305_vm5, %v255_v27, %v313_v43  ;;  %v336_v49 = vmul.f32 0.2, %v296_v30  ;;  %v337_v50 = vmul.f32 0.2, %v297_v31 }
  0x1b   : > { %v536_v51 = vpack.c.bf16 %v351_v46, %v350_v45  ;;  %v511_v52 = vunpack.c.l.bf16 %v554_v38  ;;  %v512_v53 = vunpack.c.h.bf16 %v554_v38  ;;  %v527_v54 = vunpack.c.l.bf16 %v557_v39 }
  0x1c   : > { %v344_v56 = vsel %vm328_vm6, %v296_v30, %v336_v49  ;;  %v345_v57 = vsel %vm329_vm7, %v297_v31, %v337_v50  ;;  %v528_v58 = vunpack.c.h.bf16 %v557_v39  ;;  %v515_v59 = vunpack.c.l.bf16 %v555_v44 }
  0x1d   : > { %537 = vst [vmem:[%s672_s8] sm:$0xff] %v536_v51   ;;  %v352_v60 = vadd.f32 %v344_v56, %v320_v47  ;;  %v353_v61 = vadd.f32 %v345_v57, %v321_v48  ;;  %v243_v62 = vmul.f32 %v511_v52, %v630_v2  ;;  %v244_v63 = vmul.f32 %v512_v53, %v630_v2 }
  0x1e   : > { %v285_v0 = vmul.f32 %v527_v54, %v637_v7  ;;  %v286_v1 = vmul.f32 %v528_v58, %v637_v7  ;;  %v516_v3 = vunpack.c.h.bf16 %v555_v44  ;;  %v245_v4 = vmul.f32 %v515_v59, %v630_v2 }
  0x1f   : > { %v541_v5 = vpack.c.bf16 %v353_v61, %v352_v60  ;;  %v256_v6 = vadd.f32 %v642_v10, %v243_v62  ;;  %v257_v8 = vadd.f32 %v642_v10, %v244_v63  ;;  %v531_v9 = vunpack.c.l.bf16 %v558_v55 }
  0x20   : > { %v298_v11 = vadd.f32 %v649_v17, %v285_v0  ;;  %v299_v12 = vadd.f32 %v649_v17, %v286_v1  ;;  %v246_v13 = vmul.f32 %v516_v3, %v630_v2  ;;  %v258_v14 = vadd.f32 %v642_v10, %v245_v4 }
  0x21   : > { %559 = vst [vmem:[%s672_s8 + $0x8] sm:$0xff] %v541_v5   ;;  %vm306_vm8 = vcmp.gt.f32.partialorder %v256_v6, 0.0  ;;  %vm307_vm9 = vcmp.gt.f32.partialorder %v257_v8, 0.0  ;;  %v314_v15 = vmul.f32 0.2, %v256_v6  ;;  %v532_v23 = vunpack.c.h.bf16 %v558_v55 }
  0x22   : > { %v315_v16 = vmul.f32 0.2, %v257_v8  ;;  %vm330_vm10 = vcmp.gt.f32.partialorder %v298_v11, 0.0  ;;  %vm331_vm11 = vcmp.gt.f32.partialorder %v299_v12, 0.0  ;;  %v338_v18 = vmul.f32 0.2, %v298_v11 }
  0x23   : > { %v339_v19 = vmul.f32 0.2, %v299_v12  ;;  %v322_v20 = vsel %vm306_vm8, %v256_v6, %v314_v15  ;;  %v259_v22 = vadd.f32 %v642_v10, %v246_v13  ;;  %v287_v2 = vmul.f32 %v531_v9, %v637_v7 }
  0x24   : > { %v323_v21 = vsel %vm307_vm9, %v257_v8, %v315_v16  ;;  %v346_v24 = vsel %vm330_vm10, %v298_v11, %v338_v18  ;;  %v288_v28 = vmul.f32 %v532_v23, %v637_v7  ;;  %vm308_vm12 = vcmp.gt.f32.partialorder %v258_v14, 0.0 }
  0x25   : > { %v347_v25 = vsel %vm331_vm11, %v299_v12, %v339_v19  ;;  %v354_v26 = vadd.f32 %v346_v24, %v322_v20  ;;  %v300_v29 = vadd.f32 %v649_v17, %v287_v2  ;;  %vm309_vm13 = vcmp.gt.f32.partialorder %v259_v22, 0.0 }
  0x26   : > { %v355_v27 = vadd.f32 %v347_v25, %v323_v21  ;;  %v316_v30 = vmul.f32 0.2, %v258_v14  ;;  %v317_v31 = vmul.f32 0.2, %v259_v22  ;;  %v301_v10 = vadd.f32 %v649_v17, %v288_v28 }
  0x27   : > { %vm332_vm14 = vcmp.gt.f32.partialorder %v300_v29, 0.0  ;;  %v340_v34 = vmul.f32 0.2, %v300_v29 }
  0x28   : > { %v546_v32 = vpack.c.bf16 %v355_v27, %v354_v26  ;;  %v324_v33 = vsel %vm308_vm12, %v258_v14, %v316_v30  ;;  %v325_v35 = vsel %vm309_vm13, %v259_v22, %v317_v31  ;;  %vm333_vm15 = vcmp.gt.f32.partialorder %v301_v10, 0.0 }
  0x29   : > { %v341_v36 = vmul.f32 0.2, %v301_v10  ;;  %v348_v37 = vsel %vm332_vm14, %v300_v29, %v340_v34 }
  0x2a   : > { %560 = vst [vmem:[%s672_s8 + $0x10] sm:$0xff] %v546_v32   ;;  %v356_v7 = vadd.f32 %v348_v37, %v324_v33 }
  0x2b   : > { %v349_v38 = vsel %vm333_vm15, %v301_v10, %v341_v36 }
  0x2c   : > { %v357_v39 = vadd.f32 %v349_v38, %v325_v35 }
  0x2e   : > { %v551_v40 = vpack.c.bf16 %v357_v39, %v356_v7 }
  0x30   : > { %561 = vst [vmem:[%s672_s8 + $0x18] sm:$0xff] %v551_v40  }
  0x31 PF: > { %s14_s15 = sadd.s32 1, %s576_s15  }
  0x32   : > { %p11_p4 = scmp.ge.s32.totalorder %s14_s15, 4  }
  0x34   :  { %13 = sbr.rel (!%p11_p4) target bundleno = 1 (0x1), region = 69 }

// kernel: down_block_comp.3
= control target key start
LH: loop header
LB: loop body
LE: loop exit
PB: predicated region body
PF: predicated region fallthrough
CT: control target
= control target key end

     0   :  { %s1494_s15 = smov 0   ;;  %s1723_s0 = inlined_call_operand.vmem [shape: bf16[2,9,9,16], index: 0, kind: input, shape index: {}]   ;;  %s1724_s1 = inlined_call_operand.vmem [shape: bf16[4,16,256], index: 1, kind: input, shape index: {}]   ;;  %s1725_s2 = inlined_call_operand.vmem [shape: bf16[2,64,128], index: 2, kind: output, shape index: {0}]   ;;  %s1726_s3 = inlined_call_operand.vmem [shape: bf16[2,64,128], index: 3, kind: output, shape index: {1}]   ;;  %s1727_s4 = inlined_call_operand.vmem [shape: f32[2,2,256], index: 4, kind: output, shape index: {2}]  }
   0x1 LB: > { %s1264_s16 = sadd.s32 4294967295, %s1466_s15   ;;  %p1268_p0 = scmp.ge.s32.totalorder %s1466_s15, 1  ;;  %s1466_s15 = sphi %s1494_s15, %s15_s15  }
   0x2   : > { %p167_p1 = scmp.lt.s32.totalorder %s1466_s15, 3 }
   0x4   : > { %p168_p2 = pnand %p1268_p0, %p167_p1 }
   0x5   : > { %p203_p3 = scmp.lt.s32.totalorder (!%p168_p2), %s1264_s16, 1 }
   0x6   : > { %171 = sbr.rel (%p168_p2) target bundleno = 308 (0x134), region = 28 }
   0xb   : > { %v1440_v0 = vld [vmem:[%s1724_s1 + $0x4] ss:$8 sps:$4 sm:$0xff]   ;;  %v1442_v1 = vld [vmem:[%s1724_s1] ss:$8 sps:$4 sm:$0xff]   ;;  %v1468_v2 = vmov 0   ;;  %s1731_s16 = smov (!%p203_p3, %s1264_s16), 1 }
   0xc   : > { %542 = vmatprep.mubr.bf16.mxu1 %v1468_v2  ;;  %427 = vmatprep.mubr.bf16.mxu0 %v1468_v2  ;;  %v1443_v3 = vld [vmem:[%s1724_s1 + $0x14] ss:$8 sps:$4 sm:$0xff]   ;;  %v1445_v4 = vld [vmem:[%s1724_s1 + $0x10] ss:$8 sps:$4 sm:$0xff]   ;;  %v1449_v5 = vld [vmem:[%s1724_s1 + $0x24] ss:$8 sps:$4 sm:$0xff]  }
   0xd   : > { %524 = vmatprep.subr.bf16.mxu1 %v1440_v0  ;;  %409 = vmatprep.subr.bf16.mxu0 %v1443_v3  ;;  %s1430_s27 = smul.u32 72, %s1731_s16  ;;  %vm382_vm0 = vcmask 130048   ;;  %vm242_vm1 = vsmask.f32 3328  ;;  %vm243_vm2 = vsmask.f32 7440 }
   0xe   : > { %525 = vmatpush1.bf16.msra.mxu1 %v1442_v1  ;;  %410 = vmatpush1.bf16.msra.mxu0 %v1445_v4  ;;  %v1450_v6 = vld [vmem:[%s1724_s1 + $0x30] ss:$8 sps:$4 sm:$0xff]   ;;  %v1452_v7 = vld [vmem:[%s1724_s1 + $0x34] ss:$8 sps:$4 sm:$0xff]   ;;  %vm1548_vm3 = vmor %vm242_vm1, %vm243_vm2  ;;  %s1365_s11 = sshll.u32 %s1731_s16, 5  ;;  %vm1128_vm4 = vcmask 1040384  }
   0xf   : > { %s1525_s30 = scalar_lea.vmem %s1723_s0, %s1430_s27  ;;  %651 = vmatprep.subr.bf16.mxu0 %v1449_v5  ;;  %905 = vmatprep.subr.bf16.mxu1 %v1452_v7  ;;  %v1447_v41 = vld [vmem:[%s1724_s1 + $0x20] ss:$8 sps:$4 sm:$0xff]   ;;  %s1687_s14 = scalar_lea.vmem %s1725_s2, %s1365_s11 }
  0x10   : > { %v224_v8 = vld [vmem:[%s1525_s30] sm:$0xf]  ;;  %v225_v9 = vld [vmem:[%s1525_s30 + $0x8] sm:$0xf]  ;;  %v234_v10 = vld [vmem:[%s1525_s30 + $0x4] sm:$0x1]  ;;  %s1692_s19 = scalar_lea.vmem %s1726_s3, %s1365_s11 }
  0x11   : > { %v246_v11 = vshrl.u32 %v224_v8, 16  ;;  %v249_v12 = vshll.u32 %v224_v8, 16  ;;  %v260_v13 = vshrl.u32 %v225_v9, 16  ;;  %v263_v14 = vshll.u32 %v225_v9, 16  ;;  %v235_v15 = vld [vmem:[%s1525_s30 + $0xc] sm:$0x1] }
  0x12   : > { %v1288_v16 = vcombine.low %v224_v8, %v225_v9  ;;  %v255_v17 = vshll.u32 %v234_v10, 16  ;;  %v269_v18 = vshll.u32 %v235_v15, 16  ;;  %v226_v19 = vld [vmem:[%s1525_s30 + $0x10] sm:$0xf]  ;;  %v227_v20 = vld [vmem:[%s1525_s30 + $0x18] sm:$0xf] }
  0x13   : > { %v248_v21 = vrot.slane %v246_v11, 4  ;;  %v251_v22 = vrot.slane %v249_v12, 5  ;;  %v262_v23 = vrot.slane %v260_v13, 4  ;;  %v265_v24 = vrot.slane %v263_v14, 5  ;;  %v236_v25 = vld [vmem:[%s1525_s30 + $0x14] sm:$0x1] }
  0x14   : > { %1294 = vmatmul.mubr.msk.bf16.vlgmr.msra.gmra.mxu1 %vm382_vm0, %v1288_v16  ;;  %v257_v26 = vrot.slane %v255_v17, 5  ;;  %v271_v27 = vrot.slane %v269_v18, 5  ;;  %v274_v28 = vshrl.u32 %v226_v19, 16  ;;  %v277_v29 = vshll.u32 %v226_v19, 16  ;;  %v237_v34 = vld [vmem:[%s1525_s30 + $0x1c] sm:$0x1] }
  0x15   : > { %v252_v30 = vor.u32 %v251_v22, %v248_v21  ;;  %v266_v31 = vor.u32 %v265_v24, %v262_v23  ;;  %906 = vmatpush1.bf16.msra.mxu1 %v1450_v6  ;;  %552 = vmatprep.mubr.bf16.mxu1 %v1468_v2  ;;  %v288_v32 = vshrl.u32 %v227_v20, 16  ;;  %v291_v33 = vshll.u32 %v227_v20, 16  ;;  %v1544_v35 = vld [vmem:[%s1525_s30 + $0x20] sm:$0xf]  ;;  %v229_v49 = vld [vmem:[%s1525_s30 + $0x28] sm:$0xf] }
  0x16   : > { %v276_v37 = vrot.slane %v274_v28, 4  ;;  %v279_v38 = vrot.slane %v277_v29, 5  ;;  %v1289_v39 = vcombine.low %v226_v19, %v227_v20  ;;  %v283_v40 = vshll.u32 %v236_v25, 16  ;;  %v238_v55 = vld [vmem:[%s1525_s30 + $0x24] sm:$0x1]  ;;  %s1367_s20 = sshll.u32 %s1731_s16, 2 }
  0x17   : > { %v253_v42 = vrot.slane %v252_v30, 4  ;;  %v267_v43 = vrot.slane %v266_v31, 4  ;;  %v290_v44 = vrot.slane %v288_v32, 4  ;;  %v293_v45 = vrot.slane %v291_v33, 5  ;;  %v239_v56 = vld [vmem:[%s1525_s30 + $0x2c] sm:$0x1]  ;;  %s222_s23 = scalar_lea.vmem %s1727_s4, %s1367_s20 }
  0x18   : > { %v280_v46 = vor.u32 %v279_v38, %v276_v37  ;;  %v285_v47 = vrot.slane %v283_v40, 5  ;;  %v297_v48 = vshll.u32 %v237_v34, 16  ;;  %v302_v50 = vshrl.u32 %v1544_v35, 16  ;;  %v1565_v1 = vld [vmem:[%s1525_s30 + $0x30] sm:$0xf] }
  0x19   : > { %v258_v51 = vsel %vm1548_vm3, %v253_v42, %v257_v26  ;;  %v272_v52 = vsel %vm1548_vm3, %v267_v43, %v271_v27  ;;  %v294_v53 = vor.u32 %v293_v45, %v290_v44  ;;  %v305_v54 = vshll.u32 %v1544_v35, 16  ;;  %v1572_v6 = vld [vmem:[%s1525_s30 + $0x38] sm:$0xf]  ;;  %v240_v11 = vld [vmem:[%s1525_s30 + $0x34] sm:$0x1] }
  0x1a   : > { %v1278_v57 = vcombine.low %v258_v51, %v272_v52  ;;  %v281_v58 = vrot.slane %v280_v46, 4  ;;  %v299_v59 = vrot.slane %v297_v48, 5  ;;  %v304_v60 = vrot.slane %v302_v50, 4  ;;  %v241_v16 = vld [vmem:[%s1525_s30 + $0x3c] sm:$0x1] }
  0x1b   : > { %v295_v61 = vrot.slane %v294_v53, 4  ;;  %v307_v62 = vrot.slane %v305_v54, 5  ;;  %v316_v63 = vshrl.u32 %v229_v49, 16  ;;  %v319_v0 = vshll.u32 %v229_v49, 16  ;;  %v1318_v21 = vld [vmem:[%s1525_s30 + $0x8] sm:$0xf] }
  0x1c   : > { %1284 = vmatmul.mubr.msk.bf16.vlgmr.msra.gmra.mxu0 %vm382_vm0, %v1278_v57  ;;  %1295 = vmatmul.mubr.msk.bf16.gmra.mxu1 %vm382_vm0, %v1289_v39  ;;  %v286_v3 = vsel %vm1548_vm3, %v281_v58, %v285_v47  ;;  %v311_v4 = vshll.u32 %v238_v55, 16  ;;  %v325_v5 = vshll.u32 %v239_v56, 16  ;;  %v1290_v13 = vcombine.low %v1544_v35, %v229_v49  ;;  %v1319_v26 = vld [vmem:[%s1525_s30 + $0xc] sm:$0x1]  ;;  %v1320_v30 = vld [vmem:[%s1525_s30 + $0x10] sm:$0xf] }
  0x1d   : > { %652 = vmatpush1.bf16.msra.mxu0 %v1447_v41  ;;  %437 = vmatprep.mubr.bf16.mxu0 %v1468_v2  ;;  %v300_v7 = vsel %vm1548_vm3, %v295_v61, %v299_v59  ;;  %v318_v8 = vrot.slane %v316_v63, 4  ;;  %v321_v9 = vrot.slane %v319_v0, 5  ;;  %v308_v10 = vor.u32 %v307_v62, %v304_v60  ;;  %v1321_v33 = vld [vmem:[%s1525_s30 + $0x14] sm:$0x1]  ;;  %v1322_v38 = vld [vmem:[%s1525_s30 + $0x18] sm:$0xf] }
  0x1e   : > { %v1279_v12 = vcombine.low %v286_v3, %v300_v7  ;;  %562 = vmatprep.mubr.bf16.mxu1 %v1468_v2  ;;  %v313_v14 = vrot.slane %v311_v4, 5  ;;  %v330_v15 = vshrl.u32 %v1565_v1, 16  ;;  %v327_v18 = vrot.slane %v325_v5, 5  ;;  %v1323_v50 = vld [vmem:[%s1525_s30 + $0x1c] sm:$0x1] }
  0x1f   : > { %v322_v17 = vor.u32 %v321_v9, %v318_v8  ;;  %v333_v19 = vshll.u32 %v1565_v1, 16  ;;  %v344_v20 = vshrl.u32 %v1572_v6, 16  ;;  %v309_v22 = vrot.slane %v308_v10, 4  ;;  %v1324_v55 = vld [vmem:[%s1525_s30 + $0x20] sm:$0xf] }
  0x20   : > { %v332_v23 = vrot.slane %v330_v15, 4  ;;  %v347_v24 = vshll.u32 %v1572_v6, 16  ;;  %v339_v25 = vshll.u32 %v240_v11, 16  ;;  %v353_v32 = vshll.u32 %v241_v16, 16  ;;  %v1326_v61 = vld [vmem:[%s1525_s30 + $0x28] sm:$0xf] }
  0x21   : > { %v323_v27 = vrot.slane %v322_v17, 4  ;;  %v335_v28 = vrot.slane %v333_v19, 5  ;;  %v346_v29 = vrot.slane %v344_v20, 4  ;;  %v743_v34 = vshrl.u32 %v1318_v21, 16  ;;  %v1325_v7 = vld [vmem:[%s1525_s30 + $0x24] sm:$0x1] }
  0x22   : > { %v349_v31 = vrot.slane %v347_v24, 5  ;;  %v746_v37 = vshll.u32 %v1318_v21, 16  ;;  %v314_v39 = vsel %vm1548_vm3, %v309_v22, %v313_v14  ;;  %v341_v41 = vrot.slane %v339_v25, 5 }
  0x23   : > { %v336_v35 = vor.u32 %v335_v28, %v332_v23  ;;  %v328_v40 = vsel %vm1548_vm3, %v323_v27, %v327_v18  ;;  %v745_v42 = vrot.slane %v743_v34, 4  ;;  %v752_v45 = vshll.u32 %v1319_v26, 16  ;;  %v1327_v28 = vld [vmem:[%s1525_s30 + $0x2c] sm:$0x1] }
  0x24   : > { %1285 = vmatmul.mubr.msk.bf16.gmra.mxu0 %vm382_vm0, %v1279_v12  ;;  %1296 = vmatmul.mubr.msk.bf16.gmra.mxu1 %vm382_vm0, %v1290_v13  ;;  %v350_v43 = vor.u32 %v349_v31, %v346_v29  ;;  %v748_v44 = vrot.slane %v746_v37, 5  ;;  %v757_v46 = vshrl.u32 %v1320_v30, 16  ;;  %v355_v47 = vrot.slane %v353_v32, 5  ;;  %v1328_v13 = vld [vmem:[%s1525_s30 + $0x30] sm:$0xf] }
  0x25   : > { %447 = vmatprep.mubr.bf16.mxu0 %v1468_v2  ;;  %572 = vmatprep.mubr.bf16.mxu1 %v1468_v2  ;;  %v760_v48 = vshll.u32 %v1320_v30, 16  ;;  %v766_v49 = vshll.u32 %v1321_v33, 16  ;;  %v771_v51 = vshrl.u32 %v1322_v38, 16  ;;  %v337_v52 = vrot.slane %v336_v35, 4  ;;  %v1329_v29 = vld [vmem:[%s1525_s30 + $0x34] sm:$0x1] }
  0x26   : > { %v749_v53 = vor.u32 %v748_v44, %v745_v42  ;;  %v759_v54 = vrot.slane %v757_v46, 4  ;;  %v774_v56 = vshll.u32 %v1322_v38, 16  ;;  %v1280_v57 = vcombine.low %v314_v39, %v328_v40  ;;  %v1330_v37 = vld [vmem:[%s1525_s30 + $0x38] sm:$0xf]  ;;  %v1332_v38 = vld [vmem:[%s1525_s30 + $0x40] sm:$0xf] }
  0x27   : > { %v1291_v58 = vcombine.low %v1565_v1, %v1572_v6  ;;  %v762_v59 = vrot.slane %v760_v48, 5  ;;  %v773_v60 = vrot.slane %v771_v51, 4  ;;  %v351_v62 = vrot.slane %v350_v43, 4 }
  0x28   : > { %v750_v63 = vrot.slane %v749_v53, 4  ;;  %v754_v0 = vrot.slane %v752_v45, 5  ;;  %v776_v3 = vrot.slane %v774_v56, 5  ;;  %v768_v5 = vrot.slane %v766_v49, 5  ;;  %v1331_v56 = vld [vmem:[%s1525_s30 + $0x3c] sm:$0x1] }
  0x29   : > { %v763_v4 = vor.u32 %v762_v59, %v759_v54  ;;  %v785_v8 = vshrl.u32 %v1324_v55, 16  ;;  %v788_v9 = vshll.u32 %v1324_v55, 16  ;;  %v342_v10 = vsel %vm1548_vm3, %v337_v52, %v341_v41 }
  0x2a   : > { %v777_v11 = vor.u32 %v776_v3, %v773_v60  ;;  %v780_v12 = vshll.u32 %v1323_v50, 16  ;;  %v799_v15 = vshrl.u32 %v1326_v61, 16  ;;  %v356_v16 = vsel %vm1548_vm3, %v351_v62, %v355_v47  ;;  %v1456_v50 = vld [vmem:[%s1525_s30 + $0x8] ss:$8 sps:$4 sm:$0xff]   ;;  %v1333_v60 = vld [vmem:[%s1525_s30 + $0x44] sm:$0x1] }
  0x2b   : > { %v764_v1 = vrot.slane %v763_v4, 4  ;;  %v787_v6 = vrot.slane %v785_v8, 4  ;;  %v790_v14 = vrot.slane %v788_v9, 5  ;;  %v755_v17 = vsel %vm1548_vm3, %v750_v63, %v754_v0 }
  0x2c   : > { %1286 = vmatmul.mubr.msk.bf16.gmra.mxu0 %vm382_vm0, %v1280_v57  ;;  %1297 = vmatmul.mubr.msk.bf16.gmra.mxu1 %vm382_vm0, %v1291_v58  ;;  %v794_v18 = vshll.u32 %v1325_v7, 16  ;;  %v802_v19 = vshll.u32 %v1326_v61, 16  ;;  %v813_v22 = vshrl.u32 %v1328_v13, 16  ;;  %v816_v23 = vshll.u32 %v1328_v13, 16 }
  0x2d   : > { %457 = vmatprep.mubr.bf16.mxu0 %v1468_v2  ;;  %923 = vmatprep.mubr.bf16.mxu1 %v1468_v2  ;;  %v769_v20 = vsel %vm1548_vm3, %v764_v1, %v768_v5  ;;  %v791_v21 = vor.u32 %v790_v14, %v787_v6  ;;  %v778_v24 = vrot.slane %v777_v11, 4  ;;  %v782_v25 = vrot.slane %v780_v12, 5  ;;  %v1457_v5 = vld [vmem:[%s1525_s30 + $0x18] ss:$8 sps:$4 sm:$0xff]   ;;  %v1458_v1 = vld [vmem:[%s1525_s30 + $0x28] ss:$8 sps:$4 sm:$0xff]  }
  0x2e   : > { %v1281_v26 = vcombine.low %v342_v10, %v356_v16  ;;  %v1336_v27 = vcombine.low %v755_v17, %v769_v20  ;;  %v801_v30 = vrot.slane %v799_v15, 4  ;;  %v804_v31 = vrot.slane %v802_v19, 5  ;;  %v1459_v14 = vld [vmem:[%s1525_s30 + $0x38] ss:$8 sps:$4 sm:$0xff]  }
  0x2f   : > { %v792_v32 = vrot.slane %v791_v21, 4  ;;  %v796_v33 = vrot.slane %v794_v18, 5  ;;  %v815_v34 = vrot.slane %v813_v22, 4  ;;  %v818_v35 = vrot.slane %v816_v23, 5 }
  0x30   : > { %v783_v39 = vsel %vm1548_vm3, %v778_v24, %v782_v25  ;;  %v808_v40 = vshll.u32 %v1327_v28, 16  ;;  %v805_v41 = vor.u32 %v804_v31, %v801_v30  ;;  %v822_v42 = vshll.u32 %v1329_v29, 16 }
  0x31   : > { %v827_v43 = vshrl.u32 %v1330_v37, 16  ;;  %v830_v44 = vshll.u32 %v1330_v37, 16  ;;  %v797_v45 = vsel %vm1548_vm3, %v792_v32, %v796_v33  ;;  %v819_v46 = vor.u32 %v818_v35, %v815_v34 }
  0x32   : > { %v841_v47 = vshrl.u32 %v1332_v38, 16  ;;  %v844_v48 = vshll.u32 %v1332_v38, 16  ;;  %v810_v49 = vrot.slane %v808_v40, 5  ;;  %v1337_v51 = vcombine.low %v783_v39, %v797_v45 }
  0x33   : > { %v806_v52 = vrot.slane %v805_v41, 4  ;;  %v824_v53 = vrot.slane %v822_v42, 5  ;;  %v829_v54 = vrot.slane %v827_v43, 4  ;;  %v820_v55 = vrot.slane %v819_v46, 4 }
  0x34   : > { %1287 = vmatmul.mubr.msk.bf16.gmra.mxu0 %vm382_vm0, %v1281_v26  ;;  %1342 = vmatmul.mubr.msk.bf16.vlgmr.msra.gmra.mxu1 %vm382_vm0, %v1336_v27  ;;  %v832_v57 = vrot.slane %v830_v44, 5  ;;  %v843_v58 = vrot.slane %v841_v47, 4  ;;  %v846_v59 = vrot.slane %v844_v48, 5  ;;  %v836_v62 = vshll.u32 %v1331_v56, 16 }
  0x35   : > { %669 = vmatprep.mubr.bf16.mxu0 %v1468_v2  ;;  %933 = vmatprep.mubr.bf16.mxu1 %v1468_v2  ;;  %v811_v61 = vsel %vm1548_vm3, %v806_v52, %v810_v49  ;;  %v825_v63 = vsel %vm1548_vm3, %v820_v55, %v824_v53  ;;  %v850_v4 = vshll.u32 %v1333_v60, 16 }
  0x36   : > { %v833_v0 = vor.u32 %v832_v57, %v829_v54  ;;  %v847_v3 = vor.u32 %v846_v59, %v843_v58  ;;  %v1338_v7 = vcombine.low %v811_v61, %v825_v63  ;;  %v838_v9 = vrot.slane %v836_v62, 5 }
  0x37   : > { %v852_v11 = vrot.slane %v850_v4, 5 }
  0x38   : > { %v834_v8 = vrot.slane %v833_v0, 4  ;;  %v848_v10 = vrot.slane %v847_v3, 4 }
  0x3a   : > { %v839_v12 = vsel %vm1548_vm3, %v834_v8, %v838_v9  ;;  %v853_v13 = vsel %vm1548_vm3, %v848_v10, %v852_v11 }
  0x3b   : > { %v1339_v6 = vcombine.low %v839_v12, %v853_v13 }
  0x3c   : > { %1314 = vmatmul.mubr.msk.bf16.vlgmr.msra.gmra.mxu0 %vm382_vm0, %v1456_v50  ;;  %1343 = vmatmul.mubr.msk.bf16.gmra.mxu1 %vm382_vm0, %v1337_v51 }
  0x3d   : > { %679 = vmatprep.mubr.bf16.mxu0 %v1468_v2  ;;  %943 = vmatprep.mubr.bf16.mxu1 %v1468_v2 }
  0x44   : > { %1315 = vmatmul.mubr.msk.bf16.gmra.mxu0 %vm382_vm0, %v1457_v5  ;;  %1344 = vmatmul.mubr.msk.bf16.gmra.mxu1 %vm382_vm0, %v1338_v7 }
  0x45   : > { %689 = vmatprep.mubr.bf16.mxu0 %v1468_v2  ;;  %953 = vmatprep.mubr.bf16.mxu1 %v1468_v2 }
  0x4c   : > { %1316 = vmatmul.mubr.msk.bf16.gmra.mxu0 %vm382_vm0, %v1458_v1  ;;  %1345 = vmatmul.mubr.msk.bf16.gmra.mxu1 %vm382_vm0, %v1339_v6 }
  0x4d   : > { %699 = vmatprep.mubr.bf16.mxu0 %v1468_v2 }
  0x54   : > { %1317 = vmatmul.mubr.msk.bf16.gmra.mxu0 %vm382_vm0, %v1459_v14 }
  0xd4   : > { %v544_v15 = vpop.f32.mrf.mxu1 }
  0xd6   : > { %v546_v16 = vpop.f32.mrf.mxu1 }
  0xd8   : > { %v548_v17 = vpop.f32.mrf.mxu1 }
  0xda   : > { %v550_v18 = vpop.f32.mrf.mxu1 }
  0xdc   : > { %v429_v19 = vpop.f32.mrf.mxu0  ;;  %v554_v20 = vpop.f32.mrf.mxu1 }
  0xdd   : > { %v545_v52 = vadd.f32 %v544_v15, %v429_v19 }
  0xde   : > { %v431_v21 = vpop.f32.mrf.mxu0  ;;  %v556_v36 = vpop.f32.mrf.mxu1 }
  0xdf   : > { %v547_v55 = vadd.f32 %v546_v16, %v431_v21 }
  0xe0   : > { %v433_v22 = vpop.f32.mrf.mxu0  ;;  %v558_v23 = vpop.f32.mrf.mxu1 }
  0xe1   : > { %v549_v56 = vadd.f32 %v548_v17, %v433_v22 }
  0xe2   : > { %v435_v24 = vpop.f32.mrf.mxu0  ;;  %v560_v25 = vpop.f32.mrf.mxu1 }
  0xe3   : > { %v551_v60 = vadd.f32 %v550_v18, %v435_v24 }
  0xe4   : > { %v439_v26 = vpop.f32.mrf.mxu0  ;;  %v1655_v27 = vpop.f32.mrf.mxu1 }
  0xe5   : > { %v555_v7 = vadd.f32 %v554_v20, %v439_v26 }
  0xe6   : > { %v441_v28 = vpop.f32.mrf.mxu0  ;;  %v1657_v2 = vpop.f32.mrf.mxu1 }
  0xe7   : > { %v557_v14 = vadd.f32 %v556_v36, %v441_v28 }
  0xe8   : > { %v443_v29 = vpop.f32.mrf.mxu0  ;;  %v1659_v30 = vpop.f32.mrf.mxu1 }
  0xe9   : > { %v559_v15 = vadd.f32 %v558_v23, %v443_v29 }
  0xea   : > { %v445_v31 = vpop.f32.mrf.mxu0  ;;  %v1661_v32 = vpop.f32.mrf.mxu1 }
  0xeb   : > { %v561_v19 = vadd.f32 %v560_v25, %v445_v31 }
  0xec   : > { %v449_v33 = vpop.f32.mrf.mxu0  ;;  %v1663_v34 = vpop.f32.mrf.mxu1 }
  0xee   : > { %v451_v35 = vpop.f32.mrf.mxu0  ;;  %v1665_v37 = vpop.f32.mrf.mxu1 }
  0xef   : > { %v567_v36 = vadd.f32 %v1657_v2, %v451_v35 }
  0xf0   : > { %v1667_v38 = vpop.f32.mrf.mxu0  ;;  %v1669_v39 = vpop.f32.mrf.mxu1 }
  0xf2   : > { %v1671_v40 = vpop.f32.mrf.mxu0  ;;  %v1673_v41 = vpop.f32.mrf.mxu1 }
  0xf4   : > { %v1675_v42 = vpop.f32.mrf.mxu0  ;;  %v925_v43 = vpop.f32.mrf.mxu1 }
  0xf6   : > { %v1677_v44 = vpop.f32.mrf.mxu0  ;;  %v927_v45 = vpop.f32.mrf.mxu1 }
  0xf8   : > { %v1679_v46 = vpop.f32.mrf.mxu0  ;;  %v929_v47 = vpop.f32.mrf.mxu1 }
  0xfa   : > { %v1681_v48 = vpop.f32.mrf.mxu0  ;;  %v931_v49 = vpop.f32.mrf.mxu1 }
  0xfc   : > { %v671_v50 = vpop.f32.mrf.mxu0  ;;  %v935_v51 = vpop.f32.mrf.mxu1 }
  0xfd   : > { %v710_v57 = vadd.f32 %v671_v50, %v545_v52 }
  0xfe   : > { %v673_v53 = vpop.f32.mrf.mxu0  ;;  %v937_v54 = vpop.f32.mrf.mxu1 }
  0xff   : > { %v711_v61 = vadd.f32 %v673_v53, %v547_v55  ;;  %v964_v3 = vadd.f32 %v925_v43, %v710_v57  ;;  %v569_v55 = vadd.f32 %v1659_v30, %v1667_v38 }
 0x100   : > { %v675_v58 = vpop.f32.mrf.mxu0  ;;  %v939_v59 = vpop.f32.mrf.mxu1 }
 0x101   : > { %v712_v62 = vadd.f32 %v675_v58, %v549_v56  ;;  %v965_v10 = vadd.f32 %v927_v45, %v711_v61  ;;  %v565_v45 = vadd.f32 %v1655_v27, %v449_v33  ;;  %v1086_v52 = vmul.f32 %v964_v3, %v964_v3 }
 0x102   : > { %v677_v63 = vpop.f32.mrf.mxu0  ;;  %v941_v0 = vpop.f32.mrf.mxu1  ;;  %v575_v61 = vadd.f32 %v1663_v34, %v1675_v42 }
 0x103   : > { %v966_v4 = vadd.f32 %v929_v47, %v712_v62  ;;  %v713_v5 = vadd.f32 %v677_v63, %v551_v60  ;;  %v1087_v56 = vmul.f32 %v965_v10, %v965_v10  ;;  %v571_v60 = vadd.f32 %v1661_v32, %v1671_v40 }
 0x104   : > { %v681_v8 = vpop.f32.mrf.mxu0  ;;  %v945_v9 = vpop.f32.mrf.mxu1  ;;  %v577_v62 = vadd.f32 %v1665_v37, %v1677_v44 }
 0x105   : > { %v1387_v11 = vpack.c.bf16 %v966_v4, %v964_v3  ;;  %v967_v12 = vadd.f32 %v931_v49, %v713_v5  ;;  %v714_v13 = vadd.f32 %v681_v8, %v555_v7  ;;  %v1088_v47 = vmul.f32 %v966_v4, %v966_v4 }
 0x106   : > { %v683_v1 = vpop.f32.mrf.mxu0  ;;  %v947_v6 = vpop.f32.mrf.mxu1  ;;  %v1060_v27 = vadd.f32 %v966_v4, %v964_v3 }
 0x107   : > { %1388 = vst [vmem:[%s1687_s14] sm:$0xff] %v1387_v11   ;;  %v1407_v16 = vpack.c.bf16 %v967_v12, %v965_v10  ;;  %v715_v20 = vadd.f32 %v683_v1, %v557_v14  ;;  %v968_v22 = vadd.f32 %v935_v51, %v714_v13  ;;  %v1089_v25 = vmul.f32 %v967_v12, %v967_v12 }
 0x108   : > { %v685_v17 = vpop.f32.mrf.mxu0  ;;  %v949_v18 = vpop.f32.mrf.mxu1  ;;  %v1102_v57 = vadd.f32 %v1088_v47, %v1086_v52  ;;  %v1073_v38 = vadd.f32 %v967_v12, %v965_v10  ;;  %v579_v10 = vadd.f32 %v1669_v39, %v1679_v46  ;;  %v581_v12 = vadd.f32 %v1673_v41, %v1681_v48 }
 0x109   : > { %1408 = vst [vmem:[%s1692_s19] sm:$0xff] %v1407_v16   ;;  %v716_v21 = vadd.f32 %v685_v17, %v559_v15  ;;  %v969_v23 = vadd.f32 %v937_v54, %v715_v20  ;;  %v1090_v31 = vmul.f32 %v968_v22, %v968_v22  ;;  %v1115_v63 = vadd.f32 %v1089_v25, %v1087_v56 }
 0x10a   : > { %v687_v24 = vpop.f32.mrf.mxu0  ;;  %v951_v50 = vpop.f32.mrf.mxu1 }
 0x10b   : > { %v970_v26 = vadd.f32 %v939_v59, %v716_v21  ;;  %v717_v43 = vadd.f32 %v687_v24, %v561_v19  ;;  %v1103_v3 = vadd.f32 %v1102_v57, %v1090_v31  ;;  %v1091_v5 = vmul.f32 %v969_v23, %v969_v23 }
 0x10c   : > { %v691_v49 = vpop.f32.mrf.mxu0  ;;  %v955_v54 = vpop.f32.mrf.mxu1  ;;  %v1074_v11 = vadd.f32 %v1073_v38, %v969_v23 }
 0x10d   : > { %v1392_v28 = vpack.c.bf16 %v970_v26, %v968_v22  ;;  %v971_v29 = vadd.f32 %v941_v0, %v717_v43  ;;  %v718_v53 = vadd.f32 %v691_v49, %v565_v45  ;;  %v1092_v58 = vmul.f32 %v970_v26, %v970_v26 }
 0x10e   : > { %v693_v51 = vpop.f32.mrf.mxu0  ;;  %v1061_v0 = vadd.f32 %v1060_v27, %v968_v22  ;;  %v957_v34 = vpop.f32.mrf.mxu1 }
 0x10f   : > { %1424 = vst [vmem:[%s1687_s14 + $0x8] sm:$0xff] %v1392_v28   ;;  %v1412_v33 = vpack.c.bf16 %v971_v29, %v969_v23  ;;  %v972_v59 = vadd.f32 %v945_v9, %v718_v53  ;;  %v719_v2 = vadd.f32 %v693_v51, %v567_v36  ;;  %v1104_v32 = vadd.f32 %v1103_v3, %v1092_v58 }
 0x110   : > { %v695_v35 = vpop.f32.mrf.mxu0  ;;  %v1062_v13 = vadd.f32 %v1061_v0, %v970_v26  ;;  %v1093_v1 = vmul.f32 %v971_v29, %v971_v29  ;;  %v1075_v15 = vadd.f32 %v1074_v11, %v971_v29  ;;  %v959_v26 = vpop.f32.mrf.mxu1 }
 0x111   : > { %1427 = vst [vmem:[%s1692_s19 + $0x8] sm:$0xff] %v1412_v33   ;;  %v720_v30 = vadd.f32 %v695_v35, %v569_v55  ;;  %v1094_v7 = vmul.f32 %v972_v59, %v972_v59  ;;  %v973_v40 = vadd.f32 %v947_v6, %v719_v2 }
 0x112   : > { %v697_v4 = vpop.f32.mrf.mxu0  ;;  %v1063_v19 = vadd.f32 %v1062_v13, %v972_v59  ;;  %v961_v55 = vpop.f32.mrf.mxu1 }
 0x113   : > { %v974_v8 = vadd.f32 %v949_v18, %v720_v30  ;;  %v721_v9 = vadd.f32 %v697_v4, %v571_v60  ;;  %v1116_v18 = vadd.f32 %v1115_v63, %v1091_v5  ;;  %v1105_v20 = vadd.f32 %v1104_v32, %v1094_v7 }
 0x114   : > { %v701_v42 = vpop.f32.mrf.mxu0  ;;  %v1076_v21 = vadd.f32 %v1075_v15, %v973_v40  ;;  %v1095_v22 = vmul.f32 %v973_v40, %v973_v40 }
 0x115   : > { %v1397_v37 = vpack.c.bf16 %v974_v8, %v972_v59  ;;  %v1096_v44 = vmul.f32 %v974_v8, %v974_v8  ;;  %v975_v14 = vadd.f32 %v951_v50, %v721_v9  ;;  %v722_v16 = vadd.f32 %v701_v42, %v575_v61 }
 0x116   : > { %v703_v17 = vpop.f32.mrf.mxu0  ;;  %v1117_v47 = vadd.f32 %v1116_v18, %v1093_v1  ;;  %v1064_v39 = vadd.f32 %v1063_v19, %v974_v8 }
 0x117   : > { %1425 = vst [vmem:[%s1687_s14 + $0x10] sm:$0xff] %v1397_v37   ;;  %v1417_v6 = vpack.c.bf16 %v975_v14, %v973_v40  ;;  %v976_v24 = vadd.f32 %v955_v54, %v722_v16  ;;  %v723_v43 = vadd.f32 %v703_v17, %v577_v62  ;;  %v1106_v46 = vadd.f32 %v1105_v20, %v1096_v44 }
 0x118   : > { %v705_v45 = vpop.f32.mrf.mxu0  ;;  %v1077_v48 = vadd.f32 %v1076_v21, %v975_v14  ;;  %v1097_v49 = vmul.f32 %v975_v14, %v975_v14  ;;  %v1118_v25 = vadd.f32 %v1117_v47, %v1095_v22 }
 0x119   : > { %1428 = vst [vmem:[%s1692_s19 + $0x10] sm:$0xff] %v1417_v6   ;;  %v724_v41 = vadd.f32 %v705_v45, %v579_v10  ;;  %v1098_v50 = vmul.f32 %v976_v24, %v976_v24  ;;  %v977_v36 = vadd.f32 %v957_v34, %v723_v43  ;;  %v1065_v28 = vadd.f32 %v1064_v39, %v976_v24 }
 0x11a   : > { %v707_v23 = vpop.f32.mrf.mxu0  ;;  %v1119_v58 = vadd.f32 %v1118_v25, %v1097_v49 }
 0x11b   : > { %v978_v29 = vadd.f32 %v959_v26, %v724_v41  ;;  %v725_v52 = vadd.f32 %v707_v23, %v581_v12  ;;  %v1107_v31 = vadd.f32 %v1106_v46, %v1098_v50  ;;  %v1078_v53 = vadd.f32 %v1077_v48, %v977_v36 }
 0x11c   : > { %v1099_v51 = vmul.f32 %v977_v36, %v977_v36 }
 0x11d   : > { %v1402_v56 = vpack.c.bf16 %v978_v29, %v976_v24  ;;  %v1066_v27 = vadd.f32 %v1065_v28, %v978_v29  ;;  %v1100_v33 = vmul.f32 %v978_v29, %v978_v29  ;;  %v979_v57 = vadd.f32 %v961_v55, %v725_v52 }
 0x11e   : > { %v1120_v60 = vadd.f32 %v1119_v58, %v1099_v51 }
 0x11f   : > { %1426 = vst [vmem:[%s1687_s14 + $0x18] sm:$0xff] %v1402_v56   ;;  %v1067_v59 = vrot.slane %v1066_v27, 4  ;;  %v1108_v2 = vadd.f32 %v1107_v31, %v1100_v33  ;;  %v1422_v35 = vpack.c.bf16 %v979_v57, %v977_v36  ;;  %v1079_v54 = vadd.f32 %v1078_v53, %v979_v57 }
 0x120   : > { %v1101_v61 = vmul.f32 %v979_v57, %v979_v57 }
 0x121   : > { %v1068_v62 = vadd.f32 %v1067_v59, %v1066_v27  ;;  %v1109_v30 = vrot.slane %v1108_v2, 4  ;;  %1429 = vst [vmem:[%s1692_s19 + $0x18] sm:$0xff] %v1422_v35   ;;  %v1080_v38 = vrot.slane %v1079_v54, 4 }
 0x122   : > { %v1121_v63 = vadd.f32 %v1120_v60, %v1101_v61 }
 0x123   : > { %v1069_v0 = vrot.slane %v1068_v62, 2  ;;  %v1110_v3 = vadd.f32 %v1109_v30, %v1108_v2  ;;  %v1081_v4 = vadd.f32 %v1080_v38, %v1079_v54 }
 0x124   : > { %v1122_v5 = vrot.slane %v1121_v63, 4 }
 0x125   : > { %v1111_v7 = vrot.slane %v1110_v3, 2  ;;  %v1082_v8 = vrot.slane %v1081_v4, 2  ;;  %v1070_v9 = vadd.f32 %v1069_v0, %v1068_v62 }
 0x126   : > { %v1123_v11 = vadd.f32 %v1122_v5, %v1121_v63 }
 0x127   : > { %v1112_v13 = vadd.f32 %v1111_v7, %v1110_v3  ;;  %v1083_v32 = vadd.f32 %v1082_v8, %v1081_v4  ;;  %v1071_v42 = vrot.slane %v1070_v9, 1 }
 0x128   : > { %v1124_v40 = vrot.slane %v1123_v11, 2 }
 0x129   : > { %v1113_v34 = vrot.slane %v1112_v13, 1  ;;  %v1084_v1 = vrot.slane %v1083_v32, 1  ;;  %v1072_v10 = vadd.f32 %v1071_v42, %v1070_v9 }
 0x12a   : > { %v1125_v37 = vadd.f32 %v1124_v40, %v1123_v11 }
 0x12b   : > { %v1114_v44 = vadd.f32 %v1113_v34, %v1112_v13  ;;  %v1085_v12 = vadd.f32 %v1084_v1, %v1083_v32 }
 0x12c   : > { %v1126_v14 = vrot.slane %v1125_v37, 1 }
 0x12d   : > { %v1129_v16 = vsel %vm1128_vm4, %v1072_v10, %v1114_v44 }
 0x12e   : > { %v1127_v15 = vadd.f32 %v1126_v14, %v1125_v37 }
 0x130   : > { %v1130_v17 = vsel %vm1128_vm4, %v1085_v12, %v1127_v15 }
 0x131   : > { %v1133_v18 = vcombine.low %v1129_v16, %v1130_v17 }
 0x133   : > { %1362 = vst.sshfl [vmem:[%s222_s23] sm:$0x33 pattern:$0x76325410] %v1133_v18 }
 0x134 PF: > { %s15_s15 = sadd.s32 1, %s1466_s15  }
 0x135   : > { %p12_p4 = scmp.ge.s32.totalorder %s15_s15, 4  }
 0x137   :  { %14 = sbr.rel (!%p12_p4) target bundleno = 1 (0x1), region = 86 }

// kernel: down_block_comp.4
= control target key start
LH: loop header
LB: loop body
LE: loop exit
PB: predicated region body
PF: predicated region fallthrough
CT: control target
= control target key end

     0   :  { %s2962_s15 = smov 0   ;;  %s3505_s0 = inlined_call_operand.vmem [shape: bf16[2,64,128], index: 0, kind: input, shape index: {}]   ;;  %s3506_s1 = inlined_call_operand.vmem [shape: f32[2,128], index: 1, kind: input, shape index: {}]   ;;  %s3507_s2 = inlined_call_operand.vmem [shape: bf16[3,384,128], index: 2, kind: input, shape index: {}]   ;;  %s3508_s3 = inlined_call_operand.vmem [shape: bf16[2,64,128], index: 3, kind: output, shape index: {0}]   ;;  %s3509_s4 = inlined_call_operand.vmem [shape: f32[2,2,128], index: 4, kind: output, shape index: {1}]  }
   0x1 LB: > { %s2217_s16 = sadd.s32 4294967295, %s2934_s15   ;;  %p2221_p0 = scmp.ge.s32.totalorder %s2934_s15, 1  ;;  %s2934_s15 = sphi %s2962_s15, %s15_s15  }
   0x2   : > { %p165_p1 = scmp.lt.s32.totalorder %s2934_s15, 3 }
   0x4   : > { %p166_p2 = pnand %p2221_p0, %p165_p1 }
   0x6   : > { %169 = sbr.rel (%p166_p2) target bundleno = 388 (0x184), region = 32 }
   0xb   : > { %v2796_v0 = vld [vmem:[%s3507_s2 + $0x138] sm:$0xff]   ;;  %v2799_v3 = vld [vmem:[%s3507_s2 + $0x130] sm:$0xff]   ;;  %v2802_v6 = vld [vmem:[%s3507_s2 + $0x128] sm:$0xff]   ;;  %v2936_v7 = vmov 0   ;;  %p195_p3 = scmp.lt.s32.totalorder %s2217_s16, 1  ;;  %vm215_vm0 = vcmask 1040384  }
   0xc   : > { %v2797_v1 = vld [vmem:[%s3507_s2 + $0xf8] sm:$0xff]   ;;  %2559 = vmatprep.subr.bf16.mxu0 %v2796_v0  ;;  %v2800_v4 = vld [vmem:[%s3507_s2 + $0xf0] sm:$0xff]   ;;  %210 = vst [vmem:[#allocation2] sm:$0xf] %v2936_v7  ;;  %211 = vst [vmem:[#allocation2 + $0x4] sm:$0x1] %v2936_v7 }
   0xd   : > { %v2798_v2 = vld [vmem:[%s3507_s2 + $0x178] sm:$0xff]   ;;  %2560 = vmatpush3.bf16.msra.mxu0 %v2797_v1  ;;  %v2801_v5 = vld [vmem:[%s3507_s2 + $0x170] sm:$0xff]   ;;  %213 = vst [vmem:[#allocation2 + $0x48] sm:$0xf] %v2936_v7  ;;  %214 = vst [vmem:[#allocation2 + $0x4c] sm:$0x1] %v2936_v7 }
   0xe   : > { %2715 = vmatprep.subr.bf16.mxu1 %v2798_v2  ;;  %2561 = vmatprep.subr.bf16.mxu0 %v2799_v3  ;;  %v2803_v8 = vld [vmem:[%s3507_s2 + $0xe8] sm:$0xff]   ;;  %v2805_v10 = vld [vmem:[%s3507_s2 + $0x120] sm:$0xff]   ;;  %v2808_v13 = vld [vmem:[%s3507_s2 + $0x118] sm:$0xff]   ;;  %s3521_s16 = smov (!%p195_p3, %s2217_s16), 1  ;;  %vm216_vm1 = vsmask.f32 256 }
   0xf   : > { %2716 = vmatpush3.bf16.msra.mxu1 %v2798_v2  ;;  %v2804_v9 = vld [vmem:[%s3507_s2 + $0x168] sm:$0xff]   ;;  %v2806_v11 = vld [vmem:[%s3507_s2 + $0xe0] sm:$0xff]   ;;  %v2810_v14 = vld [vmem:[%s3507_s2 + $0x158] sm:$0xff]   ;;  %s2499_s5 = sshll.u32 %s3521_s16, 5  ;;  %vm248_vm3 = vsmask.f32 7938 }
  0x10   : > { %2717 = vmatprep.subr.bf16.mxu1 %v2801_v5  ;;  %v2807_v12 = vld [vmem:[%s3507_s2 + $0x160] sm:$0xff]   ;;  %v2809_v15 = vld [vmem:[%s3507_s2 + $0xd8] sm:$0xff]   ;;  %v2811_v16 = vld [vmem:[%s3507_s2 + $0x110] sm:$0xff]   ;;  %s3048_s14 = scalar_lea.vmem %s3505_s0, %s2499_s5  ;;  %vm451_vm7 = vcmask 1043456   ;;  %s3471_s6 = scalar_lea.vmem %s3508_s3, %s2499_s5 }
  0x11   : > { %2562 = vmatpush3.bf16.msra.mxu0 %v2800_v4  ;;  %v2813_v17 = vld [vmem:[%s3507_s2 + $0x150] sm:$0xff]   ;;  %v2814_v19 = vld [vmem:[%s3507_s2 + $0x108] sm:$0xff]   ;;  %v2817_v22 = vld [vmem:[%s3507_s2 + $0x100] sm:$0xff]   ;;  %s2226_s5 = sshll.u32 %s3521_s16, 1 }
  0x12   : > { %2563 = vmatprep.subr.bf16.mxu0 %v2802_v6  ;;  %v2812_v18 = vld [vmem:[%s3507_s2 + $0xd0] sm:$0xff]   ;;  %v2815_v20 = vld [vmem:[%s3507_s2 + $0xc8] sm:$0xff]   ;;  %v2819_v23 = vld [vmem:[%s3507_s2 + $0x140] sm:$0xff]   ;;  %s208_s9 = scalar_lea.vmem %s3509_s4, %s2226_s5 }
  0x13   : > { %2718 = vmatpush3.bf16.msra.mxu1 %v2801_v5  ;;  %v2816_v21 = vld [vmem:[%s3507_s2 + $0x148] sm:$0xff]   ;;  %v224_v25 = vld [vmem:[#allocation2 + $0x10] sm:$0x1]  ;;  %v2818_v26 = vld [vmem:[%s3507_s2 + $0xc0] sm:$0xff]  }
  0x14   : > { %2719 = vmatprep.subr.bf16.mxu1 %v2804_v9  ;;  %v221_v24 = vld [vmem:[#allocation2 + $0x8] sm:$0x1]  ;;  %vm3057_vm2 = vmand %vm215_vm0, %vm216_vm1  ;;  %v253_v28 = vld [vmem:[#allocation2 + $0xc] sm:$0x1] }
  0x15   : > { %2564 = vmatpush3.bf16.msra.mxu0 %v2803_v8  ;;  %v256_v29 = vld [vmem:[#allocation2 + $0x14] sm:$0x1]  ;;  %v222_v30 = vsel %vm3057_vm2, 0, %v221_v24  ;;  %v225_v31 = vsel %vm3057_vm2, 0, %v224_v25  ;;  %vm3067_vm4 = vmand %vm215_vm0, %vm248_vm3  ;;  %v2518_v33 = vld [vmem:[%s3048_s14] sm:$0xff]  }
  0x16   : > { %2565 = vmatprep.subr.bf16.mxu0 %v2805_v10  ;;  %v3075_v34 = vld [vmem:[%s3506_s1] ss:$0 sm:$0xff]  ;;  %223 = vst [vmem:[#allocation2 + $0x8] sm:$0x1] %v222_v30  ;;  %226 = vst [vmem:[#allocation2 + $0x10] sm:$0x1] %v225_v31  ;;  %v2519_v37 = vunpack.c.l.bf16 %v2518_v33  ;;  %v2520_v38 = vunpack.c.h.bf16 %v2518_v33 }
  0x17   : > { %2720 = vmatpush3.bf16.msra.mxu1 %v2804_v9  ;;  %v254_v35 = vsel %vm3067_vm4, 0, %v253_v28  ;;  %v257_v36 = vsel %vm3067_vm4, 0, %v256_v29  ;;  %v3084_v39 = vld [vmem:[%s3506_s1 + $0x1] ss:$0 sm:$0xff]  ;;  %v2822_v40 = vld [vmem:[%s3507_s2 + $0x78] sm:$0xff]   ;;  %v2553_v47 = vld [vmem:[%s3048_s14 + $0x8] sm:$0xff]  }
  0x18   : > { %2721 = vmatprep.subr.bf16.mxu1 %v2807_v12  ;;  %255 = vst [vmem:[#allocation2 + $0xc] sm:$0x1] %v254_v35  ;;  %258 = vst [vmem:[#allocation2 + $0x14] sm:$0x1] %v257_v36  ;;  %v301_v41 = vmul.f32 %v2519_v37, %v3075_v34  ;;  %v302_v42 = vmul.f32 %v2520_v38, %v3075_v34  ;;  %v227_v43 = vld [vmem:[#allocation2 + $0x18] sm:$0x1]  ;;  %v2523_v54 = vunpack.c.l.bf16 %v2553_v47  ;;  %v2524_v55 = vunpack.c.h.bf16 %v2553_v47 }
  0x19   : > { %2566 = vmatpush3.bf16.msra.mxu0 %v2806_v11  ;;  %v228_v44 = vsel %vm3057_vm2, 0, %v227_v43  ;;  %v230_v45 = vld [vmem:[#allocation2 + $0x20] sm:$0x1]  ;;  %v259_v46 = vld [vmem:[#allocation2 + $0x1c] sm:$0x1]  ;;  %vm3113_vm10 = vmand %vm451_vm7, %vm248_vm3 }
  0x1a   : > { %2567 = vmatprep.subr.bf16.mxu0 %v2808_v13  ;;  %v314_v48 = vadd.f32 %v3084_v39, %v301_v41  ;;  %v315_v49 = vadd.f32 %v3084_v39, %v302_v42  ;;  %229 = vst [vmem:[#allocation2 + $0x18] sm:$0x1] %v228_v44  ;;  %v231_v50 = vsel %vm3057_vm2, 0, %v230_v45  ;;  %v260_v51 = vsel %vm3067_vm4, 0, %v259_v46  ;;  %v262_v52 = vld [vmem:[#allocation2 + $0x24] sm:$0x1] }
  0x1b   : > { %2722 = vmatpush3.bf16.msra.mxu1 %v2807_v12  ;;  %232 = vst [vmem:[#allocation2 + $0x20] sm:$0x1] %v231_v50  ;;  %261 = vst [vmem:[#allocation2 + $0x1c] sm:$0x1] %v260_v51  ;;  %v263_v53 = vsel %vm3067_vm4, 0, %v262_v52  ;;  %v3105_v56 = vld [vmem:[%s3507_s2 + $0xb8] sm:$0xff]   ;;  %v303_v59 = vmul.f32 %v2523_v54, %v3075_v34  ;;  %v304_v60 = vmul.f32 %v2524_v55, %v3075_v34 }
  0x1c   : > { %2723 = vmatprep.subr.bf16.mxu1 %v2810_v14  ;;  %vm322_vm5 = vcmp.gt.f32.partialorder %v314_v48, 0.0  ;;  %vm323_vm6 = vcmp.gt.f32.partialorder %v315_v49, 0.0  ;;  %v330_v57 = vmul.f32 0.2, %v314_v48  ;;  %v331_v58 = vmul.f32 0.2, %v315_v49 }
  0x1d   : > { %2568 = vmatpush3.bf16.msra.mxu0 %v2809_v15  ;;  %264 = vst [vmem:[#allocation2 + $0x24] sm:$0x1] %v263_v53  ;;  %v316_v1 = vadd.f32 %v3084_v39, %v303_v59  ;;  %v317_v2 = vadd.f32 %v3084_v39, %v304_v60  ;;  %v453_v7 = vld [vmem:[#allocation2 + $0x8] sm:$0xf]  ;;  %v2554_v42 = vld [vmem:[%s3048_s14 + $0x10] sm:$0xff]  }
  0x1e   : > { %2569 = vmatprep.subr.bf16.mxu0 %v2811_v16  ;;  %v338_v61 = vsel %vm322_vm5, %v314_v48, %v330_v57  ;;  %v339_v62 = vsel %vm323_vm6, %v315_v49, %v331_v58  ;;  %v233_v43 = vld [vmem:[#allocation2 + $0x28] sm:$0x1]  ;;  %v236_v44 = vld [vmem:[#allocation2 + $0x30] sm:$0x1]  ;;  %v265_v45 = vld [vmem:[#allocation2 + $0x2c] sm:$0x1]  ;;  %v2527_v46 = vunpack.c.l.bf16 %v2554_v42  ;;  %v2528_v47 = vunpack.c.h.bf16 %v2554_v42 }
  0x1f   : > { %2724 = vmatpush3.bf16.msra.mxu1 %v2810_v14  ;;  %v2501_v63 = vpack.c.bf16 %v338_v61, %v338_v61  ;;  %v2502_v0 = vpack.c.bf16 %v339_v62, %v339_v62  ;;  %vm324_vm8 = vcmp.gt.f32.partialorder %v316_v1, 0.0  ;;  %vm325_vm9 = vcmp.gt.f32.partialorder %v317_v2, 0.0  ;;  %v456_v13 = vld [vmem:[#allocation2 + $0xc] sm:$0x1]  ;;  %v459_v14 = vld [vmem:[#allocation2 + $0x10] sm:$0xf] }
  0x20   : > { %2725 = vmatprep.subr.bf16.mxu1 %v2813_v17  ;;  %v332_v8 = vmul.f32 0.2, %v316_v1  ;;  %v333_v9 = vmul.f32 0.2, %v317_v2  ;;  %v462_v15 = vld [vmem:[#allocation2 + $0x14] sm:$0x1] }
  0x21   : > { %2570 = vmatpush3.bf16.msra.mxu0 %v2812_v18  ;;  %v371_v3 = vshrl.u32 %v2501_v63, 16  ;;  %v374_v4 = vshll.u32 %v2501_v63, 16  ;;  %v379_v5 = vshrl.u32 %v2502_v0, 16  ;;  %v382_v6 = vshll.u32 %v2502_v0, 16  ;;  %v465_v35 = vld [vmem:[#allocation2 + $0x18] sm:$0xf] }
  0x22   : > { %2571 = vmatprep.subr.bf16.mxu0 %v2814_v19  ;;  %v340_v16 = vsel %vm324_vm8, %v316_v1, %v332_v8  ;;  %v468_v36 = vld [vmem:[#allocation2 + $0x1c] sm:$0x1]  ;;  %v471_v37 = vld [vmem:[#allocation2 + $0x20] sm:$0xf]  ;;  %v268_v52 = vld [vmem:[#allocation2 + $0x34] sm:$0x1]  ;;  %v305_v1 = vmul.f32 %v2527_v46, %v3075_v34 }
  0x23   : > { %2726 = vmatpush3.bf16.msra.mxu1 %v2813_v17  ;;  %v373_v10 = vrot.slane %v371_v3, 7  ;;  %v381_v11 = vrot.slane %v379_v5, 7  ;;  %v341_v17 = vsel %vm325_vm9, %v317_v2, %v333_v9  ;;  %v234_v53 = vsel %vm3057_vm2, 0, %v233_v43 }
  0x24   : > { %2727 = vmatprep.subr.bf16.mxu1 %v2816_v21  ;;  %v474_v38 = vld [vmem:[#allocation2 + $0x24] sm:$0x1]  ;;  %v237_v54 = vsel %vm3057_vm2, 0, %v236_v44  ;;  %v266_v55 = vsel %vm3067_vm4, 0, %v265_v45  ;;  %v269_v57 = vsel %vm3067_vm4, 0, %v268_v52  ;;  %v306_v2 = vmul.f32 %v2528_v47, %v3075_v34  ;;  %v2824_v47 = vld [vmem:[%s3507_s2 + $0x38] sm:$0xff]  }
  0x25   : > { %2572 = vmatpush3.bf16.msra.mxu0 %v2815_v20  ;;  %v376_v18 = vor.u32 %v374_v4, %v373_v10  ;;  %v377_v19 = vrot.slane %v373_v10, 4  ;;  %v384_v20 = vor.u32 %v382_v6, %v381_v11  ;;  %235 = vst [vmem:[#allocation2 + $0x28] sm:$0x1] %v234_v53  ;;  %238 = vst [vmem:[#allocation2 + $0x30] sm:$0x1] %v237_v54 }
  0x26   : > { %2573 = vmatprep.subr.bf16.mxu0 %v2817_v22  ;;  %v2503_v22 = vpack.c.bf16 %v340_v16, %v340_v16  ;;  %267 = vst [vmem:[#allocation2 + $0x2c] sm:$0x1] %v266_v55  ;;  %270 = vst [vmem:[#allocation2 + $0x34] sm:$0x1] %v269_v57  ;;  %v318_v10 = vadd.f32 %v3084_v39, %v305_v1  ;;  %v271_v53 = vld [vmem:[#allocation2 + $0x3c] sm:$0x1] }
  0x27   : > { %2728 = vmatpush3.bf16.msra.mxu1 %v2816_v21  ;;  %v385_v21 = vrot.slane %v381_v11, 4  ;;  %v454_v24 = vsel %vm3113_vm10, %v376_v18, %v453_v7  ;;  %v457_v25 = vsel %vm3057_vm2, %v377_v19, %v456_v13  ;;  %v239_v11 = vld [vmem:[#allocation2 + $0x38] sm:$0x1] }
  0x28   : > { %2729 = vmatprep.subr.bf16.mxu1 %v2819_v23  ;;  %455 = vst [vmem:[#allocation2 + $0x8] sm:$0xf] %v454_v24  ;;  %458 = vst [vmem:[#allocation2 + $0xc] sm:$0x1] %v457_v25  ;;  %v387_v29 = vshrl.u32 %v2503_v22, 16  ;;  %v390_v30 = vshll.u32 %v2503_v22, 16 }
  0x29   : > { %2574 = vmatpush3.bf16.msra.mxu0 %v2818_v26  ;;  %v460_v26 = vsel %vm3113_vm10, %v384_v20, %v459_v14  ;;  %v463_v28 = vsel %vm3057_vm2, %v385_v21, %v462_v15  ;;  %v319_v15 = vadd.f32 %v3084_v39, %v306_v2  ;;  %v240_v16 = vsel %vm3057_vm2, 0, %v239_v11  ;;  %v3155_v22 = vld [vmem:[%s3048_s14 + $0x18] sm:$0xff]  }
  0x2a   : > { %2611 = vmatprep.subr.bf16.mxu0 %v2822_v40  ;;  %461 = vst [vmem:[#allocation2 + $0x10] sm:$0xf] %v460_v26  ;;  %464 = vst [vmem:[#allocation2 + $0x14] sm:$0x1] %v463_v28  ;;  %v389_v40 = vrot.slane %v387_v29, 7  ;;  %vm326_vm11 = vcmp.gt.f32.partialorder %v318_v10, 0.0  ;;  %v2532_v46 = vunpack.c.h.bf16 %v3155_v22 }
  0x2b   : > { %2730 = vmatpush3.bf16.msra.mxu1 %v2819_v23  ;;  %v2504_v23 = vpack.c.bf16 %v341_v17, %v341_v17  ;;  %v242_v17 = vld [vmem:[#allocation2 + $0x40] sm:$0x1]  ;;  %241 = vst [vmem:[#allocation2 + $0x38] sm:$0x1] %v240_v16  ;;  %vm327_vm12 = vcmp.gt.f32.partialorder %v319_v15, 0.0 }
  0x2c   : > { %2739 = vmatprep.subr.bf16.mxu1 %v3105_v56  ;;  %v392_v48 = vor.u32 %v390_v30, %v389_v40  ;;  %v393_v49 = vrot.slane %v389_v40, 4  ;;  %v334_v24 = vmul.f32 0.2, %v318_v10  ;;  %v335_v28 = vmul.f32 0.2, %v319_v15 }
  0x2d   : > { %v395_v31 = vshrl.u32 %v2504_v23, 16  ;;  %v398_v33 = vshll.u32 %v2504_v23, 16  ;;  %v243_v29 = vsel %vm3057_vm2, 0, %v242_v17  ;;  %v483_v11 = vld [vmem:[#allocation2 + $0x30] sm:$0xf] }
  0x2e   : > { %v466_v58 = vsel %vm3113_vm10, %v392_v48, %v465_v35  ;;  %v469_v59 = vsel %vm3057_vm2, %v393_v49, %v468_v36  ;;  %244 = vst [vmem:[#allocation2 + $0x40] sm:$0x1] %v243_v29  ;;  %v343_v45 = vsel %vm327_vm12, %v319_v15, %v335_v28  ;;  %v2835_v15 = vld [vmem:[%s3507_s2 + $0x68] sm:$0xff]  }
  0x2f   : > { %v397_v41 = vrot.slane %v395_v31, 7  ;;  %v3142_v62 = vld [vmem:[#allocation2 + $0x8] sm:$0xf]  ;;  %v725_v0 = vld [vmem:[#allocation2 + $0xc] sm:$0x1] }
  0x30   : > { %467 = vst [vmem:[#allocation2 + $0x18] sm:$0xf] %v466_v58  ;;  %470 = vst [vmem:[#allocation2 + $0x1c] sm:$0x1] %v469_v59  ;;  %v2253_v4 = vcombine.low %v3142_v62, %v725_v0  ;;  %v733_v5 = vld [vmem:[#allocation2 + $0x8] sm:$0xe]  ;;  %v2506_v58 = vpack.c.bf16 %v343_v45, %v343_v45 }
  0x31   : > { %v400_v50 = vor.u32 %v398_v33, %v397_v41  ;;  %v401_v51 = vrot.slane %v397_v41, 4  ;;  %v3144_v63 = vld [vmem:[#allocation2 + $0x10] sm:$0xf]  ;;  %v726_v3 = vld [vmem:[#allocation2 + $0x14] sm:$0x1]  ;;  %v2261_v8 = vcombine.low %v733_v5, %v725_v0 }
  0x32   : > { %v734_v6 = vld [vmem:[#allocation2 + $0x10] sm:$0xe]  ;;  %v2254_v7 = vcombine.low %v3144_v63, %v726_v3  ;;  %v782_v13 = vshrl.u32 %v2253_v4, 16  ;;  %v784_v14 = vshll.u32 %v2253_v4, 16  ;;  %v2317_v31 = vcombine.low %v3142_v62, %v3144_v63  ;;  %v274_v63 = vld [vmem:[#allocation2 + $0x44] sm:$0x1] }
  0x33   : > { %v472_v60 = vsel %vm3113_vm10, %v400_v50, %v471_v37  ;;  %v475_v61 = vsel %vm3057_vm2, %v401_v51, %v474_v38  ;;  %v2262_v9 = vcombine.low %v734_v6, %v726_v3  ;;  %v861_v20 = vrot.slane %v2261_v8, 1  ;;  %v2832_v51 = vld [vmem:[%s3507_s2 + $0x70] sm:$0xff]  }
  0x34   : > { %473 = vst [vmem:[#allocation2 + $0x20] sm:$0xf] %v472_v60  ;;  %476 = vst [vmem:[#allocation2 + $0x24] sm:$0x1] %v475_v61  ;;  %v789_v18 = vshrl.u32 %v2254_v7, 16  ;;  %v791_v19 = vshll.u32 %v2254_v7, 16  ;;  %v342_v37 = vsel %vm326_vm11, %v318_v10, %v334_v24  ;;  %v2531_v38 = vunpack.c.l.bf16 %v3155_v22 }
  0x35   : > { %v862_v21 = vrot.slane %v2262_v9, 1  ;;  %v786_v23 = vrot.slane %v784_v14, 1  ;;  %v2505_v52 = vpack.c.bf16 %v342_v37, %v342_v37  ;;  %v2833_v0 = vld [vmem:[%s3507_s2 + $0x30] sm:$0xff]   ;;  %v411_v4 = vshrl.u32 %v2506_v58, 16  ;;  %v477_v9 = vld [vmem:[#allocation2 + $0x28] sm:$0xf] }
  0x36   : > { %v793_v25 = vrot.slane %v791_v19, 1  ;;  %v2834_v6 = vld [vmem:[%s3507_s2 + $0xb0] sm:$0xff]   ;;  %v414_v8 = vshll.u32 %v2506_v58, 16  ;;  %v480_v10 = vld [vmem:[#allocation2 + $0x2c] sm:$0x1]  ;;  %v275_v19 = vsel %vm3067_vm4, 0, %v274_v63  ;;  %v308_v22 = vmul.f32 %v2532_v46, %v3075_v34 }
  0x37   : > { %v2319_v26 = vcombine.low %v861_v20, %v862_v21  ;;  %v787_v30 = vor.u32 %v786_v23, %v782_v13  ;;  %v3161_v33 = vld [vmem:[#allocation2 + $0x18] sm:$0xf]  ;;  %v727_v36 = vld [vmem:[#allocation2 + $0x1c] sm:$0x1]  ;;  %v403_v2 = vshrl.u32 %v2505_v52, 16  ;;  %v406_v3 = vshll.u32 %v2505_v52, 16 }
  0x38   : > { %v794_v40 = vor.u32 %v793_v25, %v789_v18  ;;  %v735_v42 = vld [vmem:[#allocation2 + $0x18] sm:$0xe]  ;;  %v2255_v44 = vcombine.low %v3161_v33, %v727_v36  ;;  %v272_v13 = vsel %vm3067_vm4, 0, %v271_v53  ;;  %v413_v17 = vrot.slane %v411_v4, 7  ;;  %v486_v18 = vld [vmem:[#allocation2 + $0x34] sm:$0x1] }
  0x39   : > { %2731 = vmatprep.mubr.bf16.mxu1 %v2319_v26  ;;  %v2263_v49 = vcombine.low %v735_v42, %v727_v36  ;;  %v405_v16 = vrot.slane %v403_v2, 7  ;;  %273 = vst [vmem:[#allocation2 + $0x3c] sm:$0x1] %v272_v13  ;;  %276 = vst [vmem:[#allocation2 + $0x44] sm:$0x1] %v275_v19  ;;  %v307_v21 = vmul.f32 %v2531_v38, %v3075_v34  ;;  %v2837_v23 = vld [vmem:[%s3507_s2 + $0x28] sm:$0xff]  }
  0x3a   : > { %v2318_v54 = vcombine.low %v787_v30, %v794_v40  ;;  %v796_v55 = vshrl.u32 %v2255_v44, 16  ;;  %v798_v57 = vshll.u32 %v2255_v44, 16  ;;  %v2838_v24 = vld [vmem:[%s3507_s2 + $0xa8] sm:$0xff]   ;;  %v416_v28 = vor.u32 %v414_v8, %v413_v17  ;;  %v2839_v36 = vld [vmem:[%s3507_s2 + $0x60] sm:$0xff]   ;;  %v489_v4 = vld [vmem:[#allocation2 + $0x38] sm:$0xf] }
  0x3b   : > { %v3163_v35 = vld [vmem:[#allocation2 + $0x20] sm:$0xf]  ;;  %v728_v41 = vld [vmem:[#allocation2 + $0x24] sm:$0x1]  ;;  %v863_v59 = vrot.slane %v2263_v49, 1  ;;  %v408_v25 = vor.u32 %v406_v3, %v405_v16  ;;  %v409_v26 = vrot.slane %v405_v16, 4  ;;  %v320_v34 = vadd.f32 %v3084_v39, %v307_v21 }
  0x3c   : > { %v736_v43 = vld [vmem:[#allocation2 + $0x20] sm:$0xe]  ;;  %v2256_v48 = vcombine.low %v3163_v35, %v728_v41  ;;  %1134 = vmatprep.mubr.bf16.mxu0 %v2318_v54  ;;  %v800_v1 = vrot.slane %v798_v57, 1  ;;  %v417_v29 = vrot.slane %v413_v17, 4  ;;  %v484_v40 = vsel %vm3113_vm10, %v416_v28, %v483_v11  ;;  %v2854_v54 = vld [vmem:[%s3507_s2 + $0x50] sm:$0xff]  }
  0x3d   : > { %v2264_v50 = vcombine.low %v736_v43, %v728_v41  ;;  %1135 = vmatmul.mubr.bf16.vlgmr.msra.gmra.mxu0 %v2317_v31  ;;  %v2320_v31 = vcombine.low %v3161_v33, %v3163_v35  ;;  %v478_v37 = vsel %vm3113_vm10, %v408_v25, %v477_v9  ;;  %v481_v38 = vsel %vm3057_vm2, %v409_v26, %v480_v10  ;;  %v2841_v41 = vld [vmem:[%s3507_s2 + $0xa0] sm:$0xff]   ;;  %v2856_v8 = vld [vmem:[%s3507_s2 + $0x90] sm:$0xff]   ;;  %v3248_v17 = vld [vmem:[#allocation2 + $0x8] sm:$0xf] }
  0x3e   : > { %v803_v61 = vshrl.u32 %v2256_v48, 16  ;;  %v805_v62 = vshll.u32 %v2256_v48, 16  ;;  %2612 = vmatpush3.bf16.msra.mxu0 %v2824_v47  ;;  %v801_v14 = vor.u32 %v800_v1, %v796_v55  ;;  %v487_v33 = vsel %vm3057_vm2, %v417_v29, %v486_v18  ;;  %479 = vst [vmem:[#allocation2 + $0x28] sm:$0xf] %v478_v37  ;;  %482 = vst [vmem:[#allocation2 + $0x2c] sm:$0x1] %v481_v38 }
  0x3f   : > { %v864_v60 = vrot.slane %v2264_v50, 1  ;;  %2613 = vmatprep.subr.bf16.mxu0 %v2832_v51  ;;  %485 = vst [vmem:[#allocation2 + $0x30] sm:$0xf] %v484_v40  ;;  %488 = vst [vmem:[#allocation2 + $0x34] sm:$0x1] %v487_v33  ;;  %vm328_vm13 = vcmp.gt.f32.partialorder %v320_v34, 0.0 }
  0x40   : > { %v807_v7 = vrot.slane %v805_v62, 1  ;;  %v2840_v44 = vld [vmem:[%s3507_s2 + $0x20] sm:$0xff]   ;;  %v2844_v47 = vld [vmem:[%s3507_s2 + $0x58] sm:$0xff]   ;;  %v510_v26 = vld [vmem:[#allocation2 + $0xc] sm:$0x1] }
  0x41   : > { %v2322_v5 = vcombine.low %v863_v59, %v864_v60  ;;  %v2846_v48 = vld [vmem:[%s3507_s2 + $0x18] sm:$0xff]   ;;  %v218_v55 = vld [vmem:[#allocation2] sm:$0x1]  ;;  %v250_v9 = vld [vmem:[#allocation2 + $0x4] sm:$0x1] }
  0x42   : > { %v808_v20 = vor.u32 %v807_v7, %v803_v61  ;;  %2614 = vmatpush3.bf16.msra.mxu0 %v2833_v0  ;;  %v2853_v50 = vld [vmem:[%s3507_s2 + $0x98] sm:$0xff]   ;;  %v2855_v7 = vld [vmem:[%s3507_s2 + $0x10] sm:$0xff]   ;;  %v219_v16 = vsel %vm3057_vm2, 0, %v218_v55  ;;  %v518_v40 = vld [vmem:[#allocation2 + $0x8] sm:$0xe] }
  0x43   : > { %2732 = vmatmul.mubr.bf16.vlgmr.msra.gmra.mxu1 %v2322_v5  ;;  %2615 = vmatprep.subr.bf16.mxu0 %v2835_v15  ;;  %v492_v5 = vld [vmem:[#allocation2 + $0x3c] sm:$0x1]  ;;  %v2857_v15 = vld [vmem:[%s3507_s2 + $0x48] sm:$0xff]   ;;  %220 = vst [vmem:[#allocation2] sm:$0x1] %v219_v16 }
  0x44   : > { %2740 = vmatpush3.bf16.msra.mxu1 %v3105_v56  ;;  %v2321_v30 = vcombine.low %v801_v14, %v808_v20  ;;  %v321_v56 = vadd.f32 %v3084_v39, %v308_v22  ;;  %v336_v39 = vmul.f32 0.2, %v320_v34  ;;  %v498_v14 = vld [vmem:[#allocation2 + $0x44] sm:$0x1] }
  0x45   : > { %2741 = vmatprep.subr.bf16.mxu1 %v2834_v6  ;;  %v3231_v57 = vld [vmem:[#allocation2 + $0x28] sm:$0xf]  ;;  %v729_v59 = vld [vmem:[#allocation2 + $0x2c] sm:$0x1] }
  0x46   : > { %1142 = vmatprep.mubr.bf16.mxu0 %v2321_v30  ;;  %vm329_vm14 = vcmp.gt.f32.partialorder %v321_v56, 0.0  ;;  %v337_v35 = vmul.f32 0.2, %v321_v56  ;;  %v344_v42 = vsel %vm328_vm13, %v320_v34, %v336_v39  ;;  %2616 = vmatpush3.bf16.msra.mxu0 %v2837_v23  ;;  %v3233_v58 = vld [vmem:[#allocation2 + $0x30] sm:$0xf]  ;;  %v2257_v61 = vcombine.low %v3231_v57, %v729_v59 }
  0x47   : > { %1143 = vmatmul.mubr.bf16.gmra.mxu0 %v2320_v31  ;;  %v2507_v45 = vpack.c.bf16 %v344_v42, %v344_v42  ;;  %2617 = vmatprep.subr.bf16.mxu0 %v2839_v36  ;;  %v730_v60 = vld [vmem:[#allocation2 + $0x34] sm:$0x1]  ;;  %v737_v62 = vld [vmem:[#allocation2 + $0x28] sm:$0xe]  ;;  %v738_v63 = vld [vmem:[#allocation2 + $0x30] sm:$0xe]  ;;  %v2323_v12 = vcombine.low %v3231_v57, %v3233_v58 }
  0x48   : > { %2742 = vmatpush3.bf16.msra.mxu1 %v2834_v6  ;;  %v345_v43 = vsel %vm329_vm14, %v321_v56, %v337_v35  ;;  %v2258_v0 = vcombine.low %v3233_v58, %v730_v60  ;;  %v2265_v1 = vcombine.low %v737_v62, %v729_v59  ;;  %v2266_v2 = vcombine.low %v738_v63, %v730_v60  ;;  %v495_v6 = vld [vmem:[#allocation2 + $0x40] sm:$0xf]  ;;  %v2860_v31 = vld [vmem:[%s3507_s2 + $0x88] sm:$0xff]   ;;  %v3290_v57 = vld [vmem:[%s3507_s2 + $0x238] sm:$0xff]  }
  0x49   : > { %2743 = vmatprep.subr.bf16.mxu1 %v2838_v24  ;;  %v2508_v46 = vpack.c.bf16 %v345_v43, %v345_v43  ;;  %v419_v49 = vshrl.u32 %v2507_v45, 16  ;;  %v422_v51 = vshll.u32 %v2507_v45, 16  ;;  %v810_v10 = vshrl.u32 %v2257_v61, 16  ;;  %v2859_v35 = vld [vmem:[%s3507_s2 + $0x8] sm:$0xff]   ;;  %v2861_v42 = vld [vmem:[%s3507_s2 + $0x40] sm:$0xff]  }
  0x4a   : > { %2618 = vmatpush3.bf16.msra.mxu0 %v2840_v44  ;;  %v812_v11 = vshll.u32 %v2257_v61, 16  ;;  %v817_v18 = vshrl.u32 %v2258_v0, 16  ;;  %v819_v19 = vshll.u32 %v2258_v0, 16  ;;  %v865_v20 = vrot.slane %v2265_v1, 1  ;;  %v2862_v44 = vld [vmem:[%s3507_s2] sm:$0xff]  }
  0x4b   : > { %v427_v52 = vshrl.u32 %v2508_v46, 16  ;;  %v430_v53 = vshll.u32 %v2508_v46, 16  ;;  %2619 = vmatprep.subr.bf16.mxu0 %v2844_v47  ;;  %v421_v3 = vrot.slane %v419_v49, 7  ;;  %v866_v21 = vrot.slane %v2266_v2, 1  ;;  %v2863_v45 = vld [vmem:[%s3507_s2 + $0x80] sm:$0xff]  }
  0x4c   : > { %2744 = vmatpush3.bf16.msra.mxu1 %v2838_v24  ;;  %v814_v22 = vrot.slane %v812_v11, 1  ;;  %v821_v28 = vrot.slane %v819_v19, 1  ;;  %v251_v34 = vsel %vm3067_vm4, 0, %v250_v9  ;;  %v517_v47 = vld [vmem:[#allocation2] sm:$0xe] }
  0x4d   : > { %2745 = vmatprep.subr.bf16.mxu1 %v2841_v41  ;;  %v429_v13 = vrot.slane %v427_v52, 7  ;;  %v424_v23 = vor.u32 %v422_v51, %v421_v3  ;;  %v425_v24 = vrot.slane %v421_v3, 4  ;;  %v2325_v29 = vcombine.low %v865_v20, %v866_v21  ;;  %252 = vst [vmem:[#allocation2 + $0x4] sm:$0x1] %v251_v34  ;;  %v511_v49 = vld [vmem:[#allocation2 + $0x14] sm:$0x1] }
  0x4e   : > { %2620 = vmatpush3.bf16.msra.mxu0 %v2846_v48  ;;  %v815_v56 = vor.u32 %v814_v22, %v810_v10  ;;  %v822_v33 = vor.u32 %v821_v28, %v817_v18  ;;  %v2246_v48 = vcombine.low %v518_v40, %v510_v26  ;;  %v2866_v51 = vld [vmem:[%s3507_s2 + $0x1f8] sm:$0xff]   ;;  %v3285_v55 = vld [vmem:[#allocation2] sm:$0xf]  ;;  %v3292_v58 = vld [vmem:[#allocation2 + $0x10] sm:$0xf] }
  0x4f   : > { %v432_v25 = vor.u32 %v430_v53, %v429_v13  ;;  %2621 = vmatprep.subr.bf16.mxu0 %v2854_v54  ;;  %v433_v30 = vrot.slane %v429_v13, 4  ;;  %v490_v36 = vsel %vm3113_vm10, %v424_v23, %v489_v4  ;;  %v493_v37 = vsel %vm3057_vm2, %v425_v24, %v492_v5  ;;  %2735 = vmatprep.mubr.bf16.mxu1 %v2325_v29  ;;  %v512_v52 = vld [vmem:[#allocation2 + $0x1c] sm:$0x1]  ;;  %v519_v53 = vld [vmem:[#allocation2 + $0x10] sm:$0xe] }
  0x50   : > { %2746 = vmatpush3.bf16.msra.mxu1 %v2841_v41  ;;  %491 = vst [vmem:[#allocation2 + $0x38] sm:$0xf] %v490_v36  ;;  %494 = vst [vmem:[#allocation2 + $0x3c] sm:$0x1] %v493_v37  ;;  %v3267_v41 = vcombine.low %v3248_v17, %v510_v26  ;;  %v2324_v43 = vcombine.low %v815_v56, %v822_v33  ;;  %v520_v54 = vld [vmem:[#allocation2 + $0x18] sm:$0xe]  ;;  %v2247_v4 = vcombine.low %v519_v53, %v511_v49 }
  0x51   : > { %2747 = vmatprep.subr.bf16.mxu1 %v2853_v50  ;;  %v496_v38 = vsel %vm3113_vm10, %v432_v25, %v495_v6  ;;  %v499_v39 = vsel %vm3057_vm2, %v433_v30, %v498_v14  ;;  %v3294_v59 = vld [vmem:[#allocation2 + $0x18] sm:$0xf]  ;;  %v646_v62 = vrot.slane %v2246_v48, 1  ;;  %v2248_v9 = vcombine.low %v520_v54, %v512_v52  ;;  %v513_v48 = vld [vmem:[#allocation2 + $0x24] sm:$0x1] }
  0x52   : > { %497 = vst [vmem:[#allocation2 + $0x40] sm:$0xf] %v496_v38  ;;  %2622 = vmatpush3.bf16.msra.mxu0 %v2855_v7  ;;  %500 = vst [vmem:[#allocation2 + $0x44] sm:$0x1] %v499_v39  ;;  %v575_v46 = vshll.u32 %v3267_v41, 16  ;;  %1150 = vmatprep.mubr.bf16.mxu0 %v2324_v43  ;;  %v2239_v10 = vcombine.low %v3292_v58, %v511_v49  ;;  %v2240_v11 = vcombine.low %v3294_v59, %v512_v52 }
  0x53   : > { %2623 = vmatprep.subr.bf16.mxu0 %v2857_v15  ;;  %1151 = vmatmul.mubr.bf16.gmra.mxu0 %v2323_v12  ;;  %v647_v30 = vrot.slane %v2247_v4, 1  ;;  %v648_v40 = vrot.slane %v2248_v9, 1  ;;  %v514_v49 = vld [vmem:[#allocation2 + $0x2c] sm:$0x1]  ;;  %v521_v54 = vld [vmem:[#allocation2 + $0x20] sm:$0xe] }
  0x54   : > { %2748 = vmatpush3.bf16.msra.mxu1 %v2853_v50  ;;  %v573_v50 = vshrl.u32 %v3267_v41, 16  ;;  %v509_v60 = vld [vmem:[#allocation2 + $0x4] sm:$0x1]  ;;  %v577_v61 = vrot.slane %v575_v46, 1  ;;  %v582_v36 = vshll.u32 %v2239_v10, 16  ;;  %v589_v33 = vshll.u32 %v2240_v11, 16 }
  0x55   : > { %2749 = vmatprep.subr.bf16.mxu1 %v2856_v8  ;;  %v2237_v2 = vcombine.low %v3285_v55, %v509_v60  ;;  %v2245_v3 = vcombine.low %v517_v47, %v509_v60  ;;  %v587_v41 = vshrl.u32 %v2240_v11, 16  ;;  %v2358_v52 = vcombine.low %v647_v30, %v648_v40  ;;  %v2876_v60 = vld [vmem:[%s3507_s2 + $0x230] sm:$0xff]   ;;  %v2885_v30 = vld [vmem:[%s3507_s2 + $0x220] sm:$0xff]  }
  0x56   : > { %2624 = vmatpush3.bf16.msra.mxu0 %v2859_v35  ;;  %v578_v56 = vor.u32 %v577_v61, %v573_v50  ;;  %v580_v35 = vshrl.u32 %v2239_v10, 16  ;;  %v591_v43 = vrot.slane %v589_v33, 1  ;;  %v515_v10 = vld [vmem:[#allocation2 + $0x34] sm:$0x1]  ;;  %v2353_v11 = vcombine.low %v3285_v55, %v3248_v17  ;;  %v2882_v17 = vld [vmem:[%s3507_s2 + $0x228] sm:$0xff]  }
  0x57   : > { %2625 = vmatprep.subr.bf16.mxu0 %v2861_v42  ;;  %v723_v63 = vld [vmem:[#allocation2 + $0x38] sm:$0xf]  ;;  %v731_v1 = vld [vmem:[#allocation2 + $0x3c] sm:$0x1]  ;;  %v566_v16 = vshrl.u32 %v2237_v2, 16  ;;  %v568_v20 = vshll.u32 %v2237_v2, 16  ;;  %v2356_v33 = vcombine.low %v3292_v58, %v3294_v59 }
  0x58   : > { %2750 = vmatpush3.bf16.msra.mxu1 %v2856_v8  ;;  %v739_v6 = vld [vmem:[#allocation2 + $0x38] sm:$0xe]  ;;  %v2259_v8 = vcombine.low %v723_v63, %v731_v1  ;;  %v645_v21 = vrot.slane %v2245_v3, 1  ;;  %v584_v42 = vrot.slane %v582_v36, 1  ;;  %v1539_v58 = vld [vmem:[#allocation2 + $0x14] sm:$0x1] }
  0x59   : > { %2751 = vmatprep.subr.bf16.mxu1 %v2860_v31  ;;  %v724_v0 = vld [vmem:[#allocation2 + $0x40] sm:$0xf]  ;;  %v732_v5 = vld [vmem:[#allocation2 + $0x44] sm:$0x1]  ;;  %v2267_v14 = vcombine.low %v739_v6, %v731_v1  ;;  %v570_v28 = vrot.slane %v568_v20, 1  ;;  %v2249_v1 = vcombine.low %v521_v54, %v513_v48  ;;  %v2868_v6 = vld [vmem:[%s3507_s2 + $0x1b8] sm:$0xff]  }
  0x5a   : > { %v740_v7 = vld [vmem:[#allocation2 + $0x40] sm:$0xe]  ;;  %2626 = vmatpush3.bf16.msra.mxu0 %v2862_v44  ;;  %v2260_v13 = vcombine.low %v724_v0, %v732_v5  ;;  %v824_v18 = vshrl.u32 %v2259_v8, 16  ;;  %v826_v19 = vshll.u32 %v2259_v8, 16  ;;  %v2355_v29 = vcombine.low %v645_v21, %v646_v62  ;;  %v3314_v9 = vld [vmem:[#allocation2 + $0x38] sm:$0xf] }
  0x5b   : > { %v2268_v15 = vcombine.low %v740_v7, %v732_v5  ;;  %2663 = vmatprep.subr.bf16.mxu0 %v2866_v51  ;;  %v867_v22 = vrot.slane %v2267_v14, 1  ;;  %v571_v38 = vor.u32 %v570_v28, %v566_v16  ;;  %v2326_v12 = vcombine.low %v723_v63, %v724_v0  ;;  %v3300_v44 = vld [vmem:[#allocation2 + $0x20] sm:$0xf]  ;;  %v522_v0 = vld [vmem:[#allocation2 + $0x28] sm:$0xe]  ;;  %v2900_v54 = vld [vmem:[%s3507_s2 + $0x210] sm:$0xff]  }
  0x5c   : > { %2752 = vmatpush3.bf16.msra.mxu1 %v2860_v31  ;;  %v831_v24 = vshrl.u32 %v2260_v13, 16  ;;  %v833_v25 = vshll.u32 %v2260_v13, 16  ;;  %v828_v26 = vrot.slane %v826_v19, 1  ;;  %v2241_v50 = vcombine.low %v3300_v44, %v513_v48  ;;  %v3309_v5 = vld [vmem:[#allocation2 + $0x30] sm:$0xf] }
  0x5d   : > { %2753 = vmatprep.subr.bf16.mxu1 %v2863_v45  ;;  %v868_v23 = vrot.slane %v2268_v15, 1  ;;  %v2354_v47 = vcombine.low %v571_v38, %v578_v56  ;;  %v585_v61 = vor.u32 %v584_v42, %v580_v35  ;;  %v592_v62 = vor.u32 %v591_v43, %v587_v41  ;;  %v2874_v13 = vld [vmem:[%s3507_s2 + $0x1f0] sm:$0xff]   ;;  %v516_v16 = vld [vmem:[#allocation2 + $0x3c] sm:$0x1]  ;;  %v524_v21 = vld [vmem:[#allocation2 + $0x38] sm:$0xe] }
  0x5e   : > { %v835_v34 = vrot.slane %v833_v25, 1  ;;  %v829_v37 = vor.u32 %v828_v26, %v824_v18  ;;  %v596_v53 = vshll.u32 %v2241_v50, 16  ;;  %v594_v2 = vshrl.u32 %v2241_v50, 16  ;;  %v523_v18 = vld [vmem:[#allocation2 + $0x30] sm:$0xe]  ;;  %v2879_v56 = vld [vmem:[%s3507_s2 + $0x1e8] sm:$0xff]  }
  0x5f   : > { %v2328_v31 = vcombine.low %v867_v22, %v868_v23  ;;  %v2250_v4 = vcombine.low %v522_v0, %v514_v49  ;;  %v649_v8 = vrot.slane %v2249_v1, 1  ;;  %v2243_v19 = vcombine.low %v3309_v5, %v515_v10  ;;  %v2891_v42 = vld [vmem:[%s3507_s2 + $0x218] sm:$0xff]   ;;  %v3347_v43 = vld [vmem:[#allocation2 + $0x10] sm:$0xf]  ;;  %v1541_v1 = vld [vmem:[#allocation2 + $0x24] sm:$0x1] }
  0x60   : > { %2754 = vmatpush3.bf16.msra.mxu1 %v2863_v45  ;;  %v836_v39 = vor.u32 %v835_v34, %v831_v24  ;;  %v3302_v45 = vld [vmem:[#allocation2 + $0x28] sm:$0xf]  ;;  %v598_v7 = vrot.slane %v596_v53, 1  ;;  %v2357_v20 = vcombine.low %v585_v61, %v592_v62  ;;  %v2244_v22 = vcombine.low %v3314_v9, %v516_v16  ;;  %v1540_v59 = vld [vmem:[#allocation2 + $0x1c] sm:$0x1] }
  0x61   : > { %2763 = vmatprep.subr.bf16.mxu1 %v3290_v57  ;;  %2736 = vmatmul.mubr.bf16.gmra.mxu1 %v2328_v31  ;;  %v2242_v51 = vcombine.low %v3302_v45, %v514_v49  ;;  %v650_v15 = vrot.slane %v2250_v4, 1  ;;  %v2251_v23 = vcombine.low %v523_v18, %v515_v10  ;;  %v2252_v55 = vcombine.low %v524_v21, %v516_v16  ;;  %v1547_v50 = vld [vmem:[#allocation2 + $0x10] sm:$0xe]  ;;  %v2888_v53 = vld [vmem:[%s3507_s2 + $0x1d8] sm:$0xff]   ;;  %v1549_v10 = vld [vmem:[#allocation2 + $0x20] sm:$0xe] }
  0x62   : > { %2755 = vmatprep.mubr.bf16.mxu1 %v2355_v29  ;;  %v2327_v46 = vcombine.low %v829_v37, %v836_v39  ;;  %v610_v26 = vshll.u32 %v2243_v19, 16  ;;  %v617_v29 = vshll.u32 %v2244_v22, 16  ;;  %v599_v31 = vor.u32 %v598_v7, %v594_v2  ;;  %v2881_v37 = vld [vmem:[%s3507_s2 + $0x1a8] sm:$0xff]   ;;  %v2883_v39 = vld [vmem:[%s3507_s2 + $0x1e0] sm:$0xff]  }
  0x63   : > { %v603_v63 = vshll.u32 %v2242_v51, 16  ;;  %v601_v3 = vshrl.u32 %v2242_v51, 16  ;;  %v2361_v24 = vcombine.low %v649_v8, %v650_v15  ;;  %v651_v25 = vrot.slane %v2251_v23, 1  ;;  %v1548_v51 = vld [vmem:[#allocation2 + $0x18] sm:$0xe]  ;;  %v2894_v23 = vld [vmem:[%s3507_s2 + $0x1d0] sm:$0xff]  }
  0x64   : > { %1158 = vmatprep.mubr.bf16.mxu0 %v2327_v46  ;;  %v652_v28 = vrot.slane %v2252_v55, 1  ;;  %v608_v38 = vshrl.u32 %v2243_v19, 16  ;;  %v612_v40 = vrot.slane %v610_v26, 1  ;;  %v615_v35 = vshrl.u32 %v2244_v22, 16  ;;  %v3349_v46 = vld [vmem:[#allocation2 + $0x18] sm:$0xf] }
  0x65   : > { %1159 = vmatmul.mubr.bf16.gmra.mxu0 %v2326_v12  ;;  %v605_v14 = vrot.slane %v603_v63, 1  ;;  %v619_v41 = vrot.slane %v617_v29, 1  ;;  %v2389_v48 = vcombine.low %v3347_v43, %v1539_v58  ;;  %v2390_v49 = vcombine.low %v3349_v46, %v1540_v59  ;;  %v1542_v2 = vld [vmem:[#allocation2 + $0x2c] sm:$0x1]  ;;  %v3364_v7 = vld [vmem:[#allocation2 + $0x28] sm:$0xf] }
  0x66   : > { %1432 = vmatprep.mubr.bf16.mxu0 %v2354_v47  ;;  %v2364_v36 = vcombine.low %v651_v25, %v652_v28  ;;  %v613_v47 = vor.u32 %v612_v40, %v608_v38  ;;  %v2397_v61 = vcombine.low %v1547_v50, %v1539_v58  ;;  %v2398_v62 = vcombine.low %v1548_v51, %v1540_v59  ;;  %v1550_v18 = vld [vmem:[#allocation2 + $0x28] sm:$0xe]  ;;  %v1552_v22 = vld [vmem:[#allocation2 + $0x38] sm:$0xe]  ;;  %v1544_v25 = vld [vmem:[#allocation2 + $0x3c] sm:$0x1] }
  0x67   : > { %v606_v34 = vor.u32 %v605_v14, %v601_v3  ;;  %v1598_v63 = vshll.u32 %v2389_v48, 16  ;;  %v1605_v0 = vshll.u32 %v2390_v49, 16  ;;  %v2359_v8 = vcombine.low %v3300_v44, %v3302_v45  ;;  %v1551_v45 = vld [vmem:[#allocation2 + $0x30] sm:$0xe]  ;;  %v245_v29 = vld [vmem:[#allocation2 + $0x48] sm:$0x1] }
  0x68   : > { %v1675_v3 = vrot.slane %v2397_v61, 1  ;;  %v1676_v4 = vrot.slane %v2398_v62, 1  ;;  %v1596_v14 = vshrl.u32 %v2389_v48, 16  ;;  %v1603_v15 = vshrl.u32 %v2390_v49, 16  ;;  %v3391_v40 = vld [vmem:[#allocation2 + $0x30] sm:$0xf] }
  0x69   : > { %2756 = vmatmul.mubr.bf16.vlgmr.msra.gmra.mxu1 %v2358_v52  ;;  %v2360_v12 = vcombine.low %v599_v31, %v606_v34  ;;  %v2884_v52 = vld [vmem:[%s3507_s2 + $0x1a0] sm:$0xff]   ;;  %v1600_v19 = vrot.slane %v1598_v63, 1  ;;  %v3375_v44 = vcombine.low %v3364_v7, %v1542_v2  ;;  %v2399_v55 = vcombine.low %v1549_v10, %v1541_v1  ;;  %v2899_v31 = vld [vmem:[%s3507_s2 + $0x190] sm:$0xff]  }
  0x6a   : > { %2764 = vmatpush3.bf16.msra.mxu1 %v3290_v57  ;;  %v2875_v57 = vld [vmem:[%s3507_s2 + $0x1b0] sm:$0xff]   ;;  %2759 = vmatprep.mubr.bf16.mxu1 %v2361_v24  ;;  %v2455_v16 = vcombine.low %v1675_v3, %v1676_v4  ;;  %v2402_v28 = vcombine.low %v1552_v22, %v1544_v25  ;;  %v2907_v34 = vld [vmem:[%s3507_s2 + $0x200] sm:$0xff]   ;;  %v246_v58 = vsel %vm3057_vm2, 0, %v245_v29  ;;  %v1554_v4 = vld [vmem:[#allocation2 + $0x48] sm:$0xe]  ;;  %v2453_v10 = vcombine.low %v3347_v43, %v3349_v46 }
  0x6b   : > { %2765 = vmatprep.subr.bf16.mxu1 %v2876_v60  ;;  %v1543_v24 = vld [vmem:[#allocation2 + $0x34] sm:$0x1]  ;;  %v1619_v38 = vshll.u32 %v3375_v44, 16  ;;  %247 = vst [vmem:[#allocation2 + $0x48] sm:$0x1] %v246_v58 }
  0x6c   : > { %v2401_v26 = vcombine.low %v1551_v45, %v1543_v24  ;;  %v1680_v49 = vrot.slane %v2402_v28, 1 }
  0x6d   : > { %1433 = vmatmul.mubr.bf16.vlgmr.msra.gmra.mxu0 %v2353_v11  ;;  %v2890_v11 = vld [vmem:[%s3507_s2 + $0x198] sm:$0xff]   ;;  %v1621_v51 = vrot.slane %v1619_v38, 1 }
  0x6e   : > { %2766 = vmatpush3.bf16.msra.mxu1 %v2876_v60  ;;  %2664 = vmatpush3.bf16.msra.mxu0 %v2868_v6  ;;  %v620_v60 = vor.u32 %v619_v41, %v615_v35  ;;  %v3362_v6 = vld [vmem:[#allocation2 + $0x20] sm:$0xf]  ;;  %v1677_v35 = vrot.slane %v2399_v55, 1  ;;  %v3398_v41 = vld [vmem:[#allocation2 + $0x38] sm:$0xf]  ;;  %v1679_v48 = vrot.slane %v2401_v26, 1 }
  0x6f   : > { %1440 = vmatprep.mubr.bf16.mxu0 %v2357_v20  ;;  %2665 = vmatprep.subr.bf16.mxu0 %v2874_v13  ;;  %v1607_v20 = vrot.slane %v1605_v0, 1  ;;  %v3372_v21 = vcombine.low %v3362_v6, %v1541_v1  ;;  %v2394_v32 = vcombine.low %v3398_v41, %v1544_v25  ;;  %v2906_v0 = vld [vmem:[%s3507_s2 + $0x180] sm:$0xff]  }
  0x70   : > { %2767 = vmatprep.subr.bf16.mxu1 %v2882_v17  ;;  %v2363_v13 = vcombine.low %v613_v47, %v620_v60  ;;  %v2903_v47 = vld [vmem:[%s3507_s2 + $0x188] sm:$0xff]   ;;  %v2461_v62 = vcombine.low %v1679_v48, %v1680_v49 }
  0x71   : > { %2760 = vmatmul.mubr.bf16.gmra.mxu1 %v2364_v36  ;;  %v1608_v36 = vor.u32 %v1607_v20, %v1603_v15  ;;  %v1633_v3 = vshll.u32 %v2394_v32, 16 }
  0x72   : > { %2768 = vmatpush3.bf16.msra.mxu1 %v2882_v17  ;;  %2666 = vmatpush3.bf16.msra.mxu0 %v2875_v57  ;;  %v2904_v17 = vld [vmem:[%s3507_s2 + $0x208] sm:$0xff]   ;;  %v2400_v57 = vcombine.low %v1550_v18, %v1542_v2 }
  0x73   : > { %2769 = vmatprep.subr.bf16.mxu1 %v2885_v30  ;;  %2667 = vmatprep.subr.bf16.mxu0 %v2879_v56  ;;  %v1601_v56 = vor.u32 %v1600_v19, %v1596_v14 }
  0x74   : > { %2779 = vmatprep.mubr.bf16.mxu1 %v2455_v16  ;;  %v1631_v16 = vshrl.u32 %v2394_v32, 16 }
  0x75   : > { %1441 = vmatmul.mubr.bf16.gmra.mxu0 %v2356_v33  ;;  %v2901_v33 = vld [vmem:[%s3507_s2 + $0x1c8] sm:$0xff]   ;;  %v2454_v27 = vcombine.low %v1601_v56, %v1608_v36 }
  0x76   : > { %2770 = vmatpush3.bf16.msra.mxu1 %v2885_v30  ;;  %2668 = vmatpush3.bf16.msra.mxu0 %v2881_v37  ;;  %v277_v30 = vld [vmem:[#allocation2 + $0x4c] sm:$0x1]  ;;  %v1612_v37 = vshll.u32 %v3372_v21, 16 }
  0x77   : > { %1448 = vmatprep.mubr.bf16.mxu0 %v2360_v12  ;;  %2669 = vmatprep.subr.bf16.mxu0 %v2883_v39  ;;  %v2362_v39 = vcombine.low %v3309_v5, %v3314_v9  ;;  %v1678_v12 = vrot.slane %v2400_v57, 1  ;;  %v278_v59 = vsel %vm3067_vm4, 0, %v277_v30  ;;  %v1617_v5 = vshrl.u32 %v3375_v44, 16 }
  0x78   : > { %2771 = vmatprep.subr.bf16.mxu1 %v2891_v42  ;;  %v2393_v9 = vcombine.low %v3391_v40, %v1543_v24  ;;  %279 = vst [vmem:[#allocation2 + $0x4c] sm:$0x1] %v278_v59  ;;  %v1614_v50 = vrot.slane %v1612_v37, 1  ;;  %v2456_v57 = vcombine.low %v3362_v6, %v3364_v7 }
  0x79   : > { %v2458_v60 = vcombine.low %v1677_v35, %v1678_v12  ;;  %v1622_v2 = vor.u32 %v1621_v51, %v1617_v5 }
  0x7a   : > { %2772 = vmatpush3.bf16.msra.mxu1 %v2891_v42  ;;  %2670 = vmatpush3.bf16.msra.mxu0 %v2884_v52  ;;  %v1610_v42 = vshrl.u32 %v3372_v21, 16  ;;  %v1545_v52 = vld [vmem:[#allocation2 + $0x44] sm:$0x1]  ;;  %v1626_v61 = vshll.u32 %v2393_v9, 16  ;;  %v1635_v21 = vrot.slane %v1633_v3, 1 }
  0x7b   : > { %2773 = vmatprep.subr.bf16.mxu1 %v2900_v54  ;;  %2671 = vmatprep.subr.bf16.mxu0 %v2888_v53  ;;  %v1553_v53 = vld [vmem:[#allocation2 + $0x40] sm:$0xe] }
  0x7c   : > { %v2403_v63 = vcombine.low %v1553_v53, %v1545_v52  ;;  %v1615_v1 = vor.u32 %v1614_v50, %v1610_v42  ;;  %v1628_v15 = vrot.slane %v1626_v61, 1  ;;  %v1636_v43 = vor.u32 %v1635_v21, %v1631_v16 }
  0x7d   : > { %1449 = vmatmul.mubr.bf16.gmra.mxu0 %v2359_v8  ;;  %v1537_v8 = vld [vmem:[#allocation2 + $0x40] sm:$0xf] }
  0x7e   : > { %2774 = vmatpush3.bf16.msra.mxu1 %v2900_v54  ;;  %2672 = vmatpush3.bf16.msra.mxu0 %v2890_v11  ;;  %v2905_v54 = vld [vmem:[%s3507_s2 + $0x1c0] sm:$0xff]   ;;  %v1624_v11 = vshrl.u32 %v2393_v9, 16  ;;  %v1681_v19 = vrot.slane %v2403_v63, 1  ;;  %v2457_v20 = vcombine.low %v1615_v1, %v1622_v2  ;;  %v2395_v44 = vcombine.low %v1537_v8, %v1545_v52 }
  0x7f   : > { %1456 = vmatprep.mubr.bf16.mxu0 %v2363_v13  ;;  %2673 = vmatprep.subr.bf16.mxu0 %v2894_v23  ;;  %v1538_v13 = vld [vmem:[#allocation2 + $0x48] sm:$0xf]  ;;  %v1546_v14 = vld [vmem:[#allocation2 + $0x4c] sm:$0x1] }
  0x80   : > { %2775 = vmatprep.subr.bf16.mxu1 %v2904_v17  ;;  %v2404_v18 = vcombine.low %v1554_v4, %v1546_v14  ;;  %v2396_v45 = vcombine.low %v1538_v13, %v1546_v14  ;;  %v1640_v46 = vshll.u32 %v2395_v44, 16  ;;  %v1638_v24 = vshrl.u32 %v2395_v44, 16 }
  0x81   : > { %v2462_v36 = vcombine.low %v1537_v8, %v1538_v13 }
  0x82   : > { %2776 = vmatpush3.bf16.msra.mxu1 %v2904_v17  ;;  %2674 = vmatpush3.bf16.msra.mxu0 %v2899_v31  ;;  %v1682_v22 = vrot.slane %v2404_v18, 1  ;;  %v1629_v17 = vor.u32 %v1628_v15, %v1624_v11  ;;  %v1647_v55 = vshll.u32 %v2396_v45, 16  ;;  %v1642_v26 = vrot.slane %v1640_v46, 1 }
  0x83   : > { %2777 = vmatprep.subr.bf16.mxu1 %v2907_v34  ;;  %2675 = vmatprep.subr.bf16.mxu0 %v2901_v33  ;;  %v1645_v28 = vshrl.u32 %v2396_v45, 16 }
  0x84   : > { %v2464_v23 = vcombine.low %v1681_v19, %v1682_v22  ;;  %v2460_v25 = vcombine.low %v1629_v17, %v1636_v43  ;;  %v1649_v29 = vrot.slane %v1647_v55, 1  ;;  %v1643_v30 = vor.u32 %v1642_v26, %v1638_v24 }
  0x85   : > { %1457 = vmatmul.mubr.bf16.gmra.mxu0 %v2362_v39 }
  0x86   : > { %2778 = vmatpush3.bf16.msra.mxu1 %v2907_v34  ;;  %2676 = vmatpush3.bf16.msra.mxu0 %v2903_v47  ;;  %v1650_v31 = vor.u32 %v1649_v29, %v1645_v28  ;;  %v2459_v34 = vcombine.low %v3391_v40, %v3398_v41 }
  0x87   : > { %1948 = vmatprep.mubr.bf16.mxu0 %v2454_v27  ;;  %2677 = vmatprep.subr.bf16.mxu0 %v2905_v54 }
  0x88   : > { %v2463_v56 = vcombine.low %v1643_v30, %v1650_v31 }
  0x89   : > { %2780 = vmatmul.mubr.bf16.vlgmr.msra.gmra.mxu1 %v2458_v60 }
  0x8a   : > { %2783 = vmatprep.mubr.bf16.mxu1 %v2461_v62  ;;  %2678 = vmatpush3.bf16.msra.mxu0 %v2906_v0 }
  0x8d   : > { %1949 = vmatmul.mubr.bf16.vlgmr.msra.gmra.mxu0 %v2453_v10 }
  0x8e   : > { %1956 = vmatprep.mubr.bf16.mxu0 %v2457_v20 }
  0x91   : > { %2784 = vmatmul.mubr.bf16.gmra.mxu1 %v2464_v23 }
  0x95   : > { %1957 = vmatmul.mubr.bf16.gmra.mxu0 %v2456_v57 }
  0x96   : > { %1964 = vmatprep.mubr.bf16.mxu0 %v2460_v25 }
  0x9d   : > { %1965 = vmatmul.mubr.bf16.gmra.mxu0 %v2459_v34 }
  0x9e   : > { %1972 = vmatprep.mubr.bf16.mxu0 %v2463_v56 }
  0xa5   : > { %1973 = vmatmul.mubr.bf16.gmra.mxu0 %v2462_v36 }
  0xfd   : > { %v2575_v37 = vpop.f32.mrf.mxu0 }
  0xff   : > { %v2576_v38 = vpop.f32.mrf.mxu0 }
 0x100   : > { %v2577_v6 = vadd.f32 %v2576_v38, %v2575_v37 }
 0x101   : > { %v2578_v7 = vpop.f32.mrf.mxu0 }
 0x103   : > { %v2579_v33 = vpop.f32.mrf.mxu0  ;;  %v2733_v58 = vpop.f32.mrf.mxu1 }
 0x104   : > { %v2580_v57 = vadd.f32 %v2579_v33, %v2578_v7 }
 0x105   : > { %v1201_v47 = vpop.f32.mrf.mxu1 }
 0x106   : > { %v1202_v30 = vadd.f32 %v2577_v6, %v1201_v47 }
 0x107   : > { %v2581_v39 = vpop.f32.mrf.mxu0  ;;  %v3425_v41 = vpop.f32.mrf.mxu1 }
 0x109   : > { %v2582_v35 = vpop.f32.mrf.mxu0  ;;  %v1204_v49 = vpop.f32.mrf.mxu1 }
 0x10a   : > { %v2583_v12 = vadd.f32 %v2582_v35, %v2581_v39  ;;  %v1205_v31 = vadd.f32 %v2580_v57, %v1204_v49 }
 0x10b   : > { %v2584_v42 = vpop.f32.mrf.mxu0 }
 0x10d   : > { %v2585_v59 = vpop.f32.mrf.mxu0 }
 0x10e   : > { %v2586_v39 = vadd.f32 %v2585_v59, %v2584_v42 }
 0x110   : > { %v1213_v6 = vadd.f32 %v3425_v41, %v2586_v39 }
 0x113   : > { %v2587_v5 = vpop.f32.mrf.mxu0 }
 0x115   : > { %v2588_v9 = vpop.f32.mrf.mxu0 }
 0x116   : > { %v3423_v40 = vadd.f32 %v2588_v9, %v2587_v5  ;;  %v1210_v9 = vadd.f32 %v2733_v58, %v2583_v12 }
 0x117   : > { %v3427_v48 = vpop.f32.mrf.mxu0 }
 0x119   : > { %v3431_v50 = vpop.f32.mrf.mxu0 }
 0x121   : > { %v3429_v27 = vpop.f32.mrf.mxu1 }
 0x123   : > { %v3433_v51 = vpop.f32.mrf.mxu1 }
 0x124   : > { %v1218_v41 = vadd.f32 %v3423_v40, %v3433_v51 }
 0x125   : > { %v3435_v32 = vpop.f32.mrf.mxu0  ;;  %v3437_v52 = vpop.f32.mrf.mxu1 }
 0x127   : > { %v3439_v53 = vpop.f32.mrf.mxu0  ;;  %v3443_v60 = vpop.f32.mrf.mxu1 }
 0x129   : > { %v3441_v54 = vpop.f32.mrf.mxu0  ;;  %v2757_v62 = vpop.f32.mrf.mxu1 }
 0x12b   : > { %v3445_v61 = vpop.f32.mrf.mxu0  ;;  %v1499_v1 = vpop.f32.mrf.mxu1 }
 0x12d   : > { %v2627_v63 = vpop.f32.mrf.mxu0  ;;  %v3447_v4 = vpop.f32.mrf.mxu1 }
 0x12f   : > { %v2628_v0 = vpop.f32.mrf.mxu0  ;;  %v1502_v11 = vpop.f32.mrf.mxu1 }
 0x130   : > { %v2629_v25 = vadd.f32 %v2628_v0, %v2627_v63 }
 0x131   : > { %v2630_v2 = vpop.f32.mrf.mxu0  ;;  %v3449_v14 = vpop.f32.mrf.mxu1 }
 0x132   : > { %3516 = vst [vmem:[#allocation3_spill] sm:$0xff] %v3449_v14  ;;  %v1435_v36 = vadd.f32 %v2629_v25, %v1202_v30 }
 0x133   : > { %v2631_v3 = vpop.f32.mrf.mxu0  ;;  %v3451_v18 = vpop.f32.mrf.mxu1 }
 0x134   : > { %v2632_v26 = vadd.f32 %v2631_v3, %v2630_v2  ;;  %v1500_v63 = vadd.f32 %v1499_v1, %v1435_v36 }
 0x135   : > { %v2633_v8 = vpop.f32.mrf.mxu0  ;;  %v3453_v21 = vpop.f32.mrf.mxu1 }
 0x136   : > { %3517 = vst [vmem:[#allocation4_spill] sm:$0xff] %v3453_v21  ;;  %v1438_v38 = vadd.f32 %v2632_v26, %v1205_v31 }
 0x137   : > { %v2634_v10 = vpop.f32.mrf.mxu0  ;;  %v3457_v22 = vpop.f32.mrf.mxu1 }
 0x138   : > { %v2635_v37 = vadd.f32 %v2634_v10, %v2633_v8  ;;  %v1503_v2 = vadd.f32 %v1502_v11, %v1438_v38 }
 0x139   : > { %v2636_v13 = vpop.f32.mrf.mxu0 }
 0x13a   : > { %v1443_v0 = vadd.f32 %v2635_v37, %v1210_v9 }
 0x13b   : > { %v2637_v15 = vpop.f32.mrf.mxu0 }
 0x13c   : > { %v2638_v7 = vadd.f32 %v2637_v15, %v2636_v13  ;;  %v1508_v59 = vadd.f32 %v2757_v62, %v1443_v0 }
 0x13d   : > { %v2639_v16 = vpop.f32.mrf.mxu0 }
 0x13e   : > { %v1446_v10 = vadd.f32 %v2638_v7, %v1213_v6 }
 0x13f   : > { %v2640_v19 = vpop.f32.mrf.mxu0 }
 0x140   : > { %v2641_v42 = vadd.f32 %v2640_v19, %v2639_v16 }
 0x141   : > { %v2642_v20 = vpop.f32.mrf.mxu0 }
 0x142   : > { %v1451_v26 = vadd.f32 %v2641_v42, %v1218_v41 }
 0x143   : > { %v2643_v44 = vpop.f32.mrf.mxu0 }
 0x144   : > { %v2644_v25 = vadd.f32 %v2643_v44, %v2642_v20  ;;  %v1516_v38 = vadd.f32 %v3451_v18, %v1451_v26 }
 0x145   : > { %v3455_v45 = vpop.f32.mrf.mxu0 }
 0x147   : > { %v3459_v23 = vpop.f32.mrf.mxu0 }
 0x149   : > { %v2781_v17 = vpop.f32.mrf.mxu1  ;;  %v3461_v43 = vpop.f32.mrf.mxu0 }
 0x14b   : > { %v3463_v46 = vpop.f32.mrf.mxu0  ;;  %v2015_v55 = vpop.f32.mrf.mxu1 }
 0x14d   : > { %v2679_v24 = vpop.f32.mrf.mxu0  ;;  %v2782_v29 = vpop.f32.mrf.mxu1 }
 0x14f   : > { %v2680_v28 = vpop.f32.mrf.mxu0  ;;  %v2018_v5 = vpop.f32.mrf.mxu1 }
 0x150   : > { %v2681_v34 = vadd.f32 %v2680_v28, %v2679_v24  ;;  %v1511_v24 = vadd.f32 %v3447_v4, %v1446_v10  ;;  %v2647_v4 = vadd.f32 %v3459_v23, %v3455_v45  ;;  %v2650_v23 = vadd.f32 %v3463_v46, %v3461_v43  ;;  %v3518_v10 = vld [vmem:[#allocation3_spill] sm:$0xff] }
 0x151   : > { %v2682_v56 = vpop.f32.mrf.mxu0  ;;  %v2785_v58 = vpop.f32.mrf.mxu1 }
 0x152   : > { %v2016_v21 = vadd.f32 %v2681_v34, %v2015_v55 }
 0x153   : > { %v2683_v35 = vpop.f32.mrf.mxu0  ;;  %v2031_v28 = vpop.f32.mrf.mxu1 }
 0x154   : > { %v2684_v14 = vadd.f32 %v2683_v35, %v2682_v56  ;;  %v2046_v49 = vadd.f32 %v2016_v21, %v1500_v63 }
 0x155   : > { %v2685_v33 = vpop.f32.mrf.mxu0  ;;  %v2786_v37 = vpop.f32.mrf.mxu1 }
 0x156   : > { %v2019_v3 = vadd.f32 %v2684_v14, %v2018_v5  ;;  %v2592_v14 = vadd.f32 %v3431_v50, %v3427_v48  ;;  %v2107_v16 = vmul.f32 %v2046_v49, %v2046_v49  ;;  %v2595_v48 = vadd.f32 %v3439_v53, %v3435_v32 }
 0x157   : > { %v2686_v47 = vpop.f32.mrf.mxu0  ;;  %v2598_v32 = vadd.f32 %v3445_v61, %v3441_v54  ;;  %v2034_v18 = vpop.f32.mrf.mxu1 }
 0x158   : > { %v2047_v57 = vadd.f32 %v2019_v3, %v1503_v2  ;;  %v2687_v8 = vadd.f32 %v2686_v47, %v2685_v33  ;;  %v1221_v40 = vadd.f32 %v2592_v14, %v3443_v60  ;;  %v1226_v60 = vadd.f32 %v3429_v27, %v2595_v48 }
 0x159   : > { %v2688_v12 = vpop.f32.mrf.mxu0  ;;  %v1229_v54 = vadd.f32 %v3437_v52, %v2598_v32 }
 0x15a   : > { %v2536_v1 = vpack.c.bf16 %v2047_v57, %v2046_v49  ;;  %v2108_v11 = vmul.f32 %v2047_v57, %v2047_v57  ;;  %v2024_v13 = vadd.f32 %v2781_v17, %v2687_v8  ;;  %v2094_v19 = vadd.f32 %v2047_v57, %v2046_v49 }
 0x15b   : > { %v2689_v15 = vpop.f32.mrf.mxu0  ;;  %v1454_v20 = vadd.f32 %v2644_v25, %v1221_v40  ;;  %v1459_v33 = vadd.f32 %v2647_v4, %v1226_v60  ;;  %v1462_v57 = vadd.f32 %v2650_v23, %v1229_v54 }
 0x15c   : > { %2537 = vst [vmem:[%s3471_s6] sm:$0xff] %v2536_v1   ;;  %v2048_v21 = vadd.f32 %v2024_v13, %v1508_v59  ;;  %v2690_v55 = vadd.f32 %v2689_v15, %v2688_v12  ;;  %v2115_v30 = vadd.f32 %v2108_v11, %v2107_v16  ;;  %v3519_v13 = vld [vmem:[#allocation4_spill] sm:$0xff] }
 0x15d   : > { %v2691_v62 = vpop.f32.mrf.mxu0  ;;  %v1519_v45 = vadd.f32 %v3457_v22, %v1454_v20  ;;  %v1524_v22 = vadd.f32 %v3518_v10, %v1459_v33  ;;  %v1527_v41 = vadd.f32 %v3519_v13, %v1462_v57 }
 0x15e   : > { %v2095_v17 = vadd.f32 %v2094_v19, %v2048_v21  ;;  %v2109_v31 = vmul.f32 %v2048_v21, %v2048_v21  ;;  %v2027_v34 = vadd.f32 %v2782_v29, %v2690_v55 }
 0x15f   : > { %v2692_v50 = vpop.f32.mrf.mxu0 }
 0x160   : > { %v2116_v51 = vadd.f32 %v2115_v30, %v2109_v31  ;;  %v2049_v56 = vadd.f32 %v2027_v34, %v1511_v24  ;;  %v2693_v36 = vadd.f32 %v2692_v50, %v2691_v62 }
 0x161   : > { %v2694_v44 = vpop.f32.mrf.mxu0 }
 0x162   : > { %v2541_v39 = vpack.c.bf16 %v2049_v56, %v2048_v21  ;;  %v2110_v29 = vmul.f32 %v2049_v56, %v2049_v56  ;;  %v2032_v35 = vadd.f32 %v2693_v36, %v2031_v28  ;;  %v2096_v9 = vadd.f32 %v2095_v17, %v2049_v56 }
 0x163   : > { %v2695_v53 = vpop.f32.mrf.mxu0 }
 0x164   : > { %2556 = vst [vmem:[%s3471_s6 + $0x8] sm:$0xff] %v2541_v39   ;;  %v2050_v5 = vadd.f32 %v2032_v35, %v1516_v38  ;;  %v2696_v7 = vadd.f32 %v2695_v53, %v2694_v44  ;;  %v2117_v27 = vadd.f32 %v2116_v51, %v2110_v29 }
 0x165   : > { %v2697_v63 = vpop.f32.mrf.mxu0 }
 0x166   : > { %v2097_v0 = vadd.f32 %v2096_v9, %v2050_v5  ;;  %v2111_v2 = vmul.f32 %v2050_v5, %v2050_v5  ;;  %v2035_v3 = vadd.f32 %v2696_v7, %v2034_v18 }
 0x167   : > { %v2698_v61 = vpop.f32.mrf.mxu0 }
 0x168   : > { %v2118_v6 = vadd.f32 %v2117_v27, %v2111_v2  ;;  %v2051_v47 = vadd.f32 %v2035_v3, %v1519_v45  ;;  %v2699_v49 = vadd.f32 %v2698_v61, %v2697_v63 }
 0x169   : > { %v2700_v8 = vpop.f32.mrf.mxu0 }
 0x16a   : > { %v2546_v42 = vpack.c.bf16 %v2051_v47, %v2050_v5  ;;  %v2112_v12 = vmul.f32 %v2051_v47, %v2051_v47  ;;  %v2040_v43 = vadd.f32 %v2785_v58, %v2699_v49  ;;  %v2098_v59 = vadd.f32 %v2097_v0, %v2051_v47 }
 0x16b   : > { %v2701_v46 = vpop.f32.mrf.mxu0 }
 0x16c   : > { %2557 = vst [vmem:[%s3471_s6 + $0x10] sm:$0xff] %v2546_v42   ;;  %v2052_v1 = vadd.f32 %v2040_v43, %v1524_v22  ;;  %v2702_v11 = vadd.f32 %v2701_v46, %v2700_v8  ;;  %v2119_v52 = vadd.f32 %v2118_v6, %v2112_v12 }
 0x16e   : > { %v2099_v14 = vadd.f32 %v2098_v59, %v2052_v1  ;;  %v2113_v15 = vmul.f32 %v2052_v1, %v2052_v1  ;;  %v2043_v16 = vadd.f32 %v2786_v37, %v2702_v11 }
 0x170   : > { %v2120_v19 = vadd.f32 %v2119_v52, %v2113_v15  ;;  %v2053_v21 = vadd.f32 %v2043_v16, %v1527_v41 }
 0x172   : > { %v2551_v55 = vpack.c.bf16 %v2053_v21, %v2052_v1  ;;  %v2100_v24 = vadd.f32 %v2099_v14, %v2053_v21  ;;  %v2114_v25 = vmul.f32 %v2053_v21, %v2053_v21 }
 0x174   : > { %2558 = vst [vmem:[%s3471_s6 + $0x18] sm:$0xff] %v2551_v55   ;;  %v2101_v58 = vrot.slane %v2100_v24, 4  ;;  %v2121_v26 = vadd.f32 %v2120_v19, %v2114_v25 }
 0x176   : > { %v2102_v62 = vadd.f32 %v2101_v58, %v2100_v24  ;;  %v2122_v28 = vrot.slane %v2121_v26, 4 }
 0x178   : > { %v2103_v30 = vrot.slane %v2102_v62, 2  ;;  %v2123_v17 = vadd.f32 %v2122_v28, %v2121_v26 }
 0x17a   : > { %v2104_v31 = vadd.f32 %v2103_v30, %v2102_v62  ;;  %v2124_v34 = vrot.slane %v2123_v17, 2 }
 0x17c   : > { %v2105_v40 = vrot.slane %v2104_v31, 1  ;;  %v2125_v48 = vadd.f32 %v2124_v34, %v2123_v17 }
 0x17e   : > { %v2126_v50 = vrot.slane %v2125_v48, 1  ;;  %v2106_v51 = vadd.f32 %v2105_v40, %v2104_v31 }
 0x180   : > { %v2127_v56 = vadd.f32 %v2126_v50, %v2125_v48 }
 0x182   : > { %v2129_v36 = vsel %vm215_vm0, %v2106_v51, %v2127_v56 }
 0x183   : > { %2130 = vst [vmem:[%s208_s9] sm:$0x3] %v2129_v36 }
 0x184 PF: > { %s15_s15 = sadd.s32 1, %s2934_s15  }
 0x185   : > { %p12_p4 = scmp.ge.s32.totalorder %s15_s15, 4  }
 0x187   :  { %14 = sbr.rel (!%p12_p4) target bundleno = 1 (0x1), region = 79 }

</bundles_post_ra>
